<compile_context>
chip_gen: v6e
topology: v6e:2x2x1
jax: 0.10.0
libtpu: 0.0.40
codegen_flags: <defaults>
</compile_context>

<pallas_src>
import functools

import jax
import jax.numpy as jnp
from jax.experimental import pallas as pl
from jax.experimental.pallas import tpu as pltpu


def _round_up(x, m):
    return (x + m - 1) // m * m


# ----------------------------------------------------------------------------
# Kernel 1: batched, K-tiled matmul with fused bias (+ optional ReLU epilogue)
# ----------------------------------------------------------------------------
def _matmul_bias_kernel(a_ref, b_ref, bias_ref, o_ref, acc_ref, *, apply_relu):
    k = pl.program_id(3)

    @pl.when(k == 0)
    def _():
        acc_ref[...] = jnp.zeros_like(acc_ref)

    acc_ref[...] += jnp.dot(a_ref[0], b_ref[0],
                            preferred_element_type=jnp.float32)

    @pl.when(k == pl.num_programs(3) - 1)
    def _():
        r = acc_ref[...] + bias_ref[...]
        if apply_relu:
            r = jnp.maximum(r, 0.0)
        o_ref[0] = r.astype(o_ref.dtype)


def matmul_bias(a, b, bias, *, apply_relu=False, out_dtype=jnp.float32,
                tm=256, tn=128, tk_max=512):
    """a: (G, M, K), b: (G, K, C), bias: (C,) -> (G, Mp, Cp) f32/bf16.

    Inputs are cast to bf16 (f32 MXU accumulation); M, K, C are zero-padded to
    tile multiples.  Caller slices the valid (M, C) region back out.
    """
    G, M, K = a.shape
    Gb, Kb, C = b.shape
    assert G == Gb and K == Kb
    tk = tk_max if K >= tk_max else _round_up(K, 128)
    Mp = _round_up(M, tm)
    Kp = _round_up(K, tk)
    Cp = _round_up(C, tn)

    a_p = jnp.pad(a.astype(jnp.bfloat16), ((0, 0), (0, Mp - M), (0, Kp - K)))
    b_p = jnp.pad(b.astype(jnp.bfloat16), ((0, 0), (0, Kp - K), (0, Cp - C)))
    bias_p = jnp.pad(bias.astype(jnp.float32), (0, Cp - C)).reshape(1, Cp)

    kern = functools.partial(_matmul_bias_kernel, apply_relu=apply_relu)
    return pl.pallas_call(
        kern,
        out_shape=jax.ShapeDtypeStruct((G, Mp, Cp), out_dtype),
        grid=(G, Mp // tm, Cp // tn, Kp // tk),
        in_specs=[
            pl.BlockSpec((1, tm, tk), lambda g, i, j, k: (g, i, k)),
            pl.BlockSpec((1, tk, tn), lambda g, i, j, k: (g, k, j)),
            pl.BlockSpec((1, tn), lambda g, i, j, k: (0, j)),
        ],
        out_specs=pl.BlockSpec((1, tm, tn), lambda g, i, j, k: (g, i, j)),
        scratch_shapes=[pltpu.VMEM((tm, tn), jnp.float32)],
        compiler_params=pltpu.CompilerParams(
            dimension_semantics=("parallel", "parallel", "parallel",
                                 "arbitrary")),
    )(a_p, b_p, bias_p)


# ----------------------------------------------------------------------------
# Kernels 2+3: tiled two-pass BatchNorm (batch stats, gamma=1, beta=0)
# ----------------------------------------------------------------------------
def _bn_stats_kernel(x_ref, s_ref, sq_ref):
    x = x_ref[...]
    s = jnp.sum(x, axis=0, keepdims=True)
    sq = jnp.sum(x * x, axis=0, keepdims=True)

    @pl.when(pl.program_id(0) == 0)
    def _():
        s_ref[...] = s
        sq_ref[...] = sq

    @pl.when(pl.program_id(0) != 0)
    def _():
        s_ref[...] += s
        sq_ref[...] += sq


def _bn_norm_kernel(x_ref, scale_ref, shift_ref, o_ref):
    o_ref[...] = x_ref[...] * scale_ref[...] + shift_ref[...]


def batchnorm(x, eps=1e-5, tm=256):
    """Training-mode BatchNorm over rows of x: (M, C) f32, C multiple of 128."""
    # TODO(synk): affine gamma/beta and running-stats update (PyTorch defaults)
    #             are not modeled; matches BatchNorm3d at init in train mode.
    M, C = x.shape
    Mp = _round_up(M, tm)
    x_p = jnp.pad(x, ((0, Mp - M), (0, 0)))  # zero rows: harmless for sums

    s_sum, sq_sum = pl.pallas_call(
        _bn_stats_kernel,
        out_shape=(jax.ShapeDtypeStruct((1, C), jnp.float32),
                   jax.ShapeDtypeStruct((1, C), jnp.float32)),
        grid=(Mp // tm,),
        in_specs=[pl.BlockSpec((tm, C), lambda i: (i, 0))],
        out_specs=(pl.BlockSpec((1, C), lambda i: (0, 0)),
                   pl.BlockSpec((1, C), lambda i: (0, 0))),
        compiler_params=pltpu.CompilerParams(
            dimension_semantics=("arbitrary",)),
    )(x_p)

    mean = s_sum[0] / M
    var = jnp.maximum(sq_sum[0] / M - mean * mean, 0.0)  # biased variance
    scale = jax.lax.rsqrt(var + eps)
    shift = -mean * scale

    y = pl.pallas_call(
        _bn_norm_kernel,
        out_shape=jax.ShapeDtypeStruct((Mp, C), jnp.float32),
        grid=(Mp // tm,),
        in_specs=[pl.BlockSpec((tm, C), lambda i: (i, 0)),
                  pl.BlockSpec((1, C), lambda i: (0, 0)),
                  pl.BlockSpec((1, C), lambda i: (0, 0))],
        out_specs=pl.BlockSpec((tm, C), lambda i: (i, 0)),
        compiler_params=pltpu.CompilerParams(
            dimension_semantics=("parallel",)),
    )(x_p, scale.reshape(1, C), shift.reshape(1, C))
    return y[:M]


# ----------------------------------------------------------------------------
# Plain-JAX glue: im2col patch extraction
# ----------------------------------------------------------------------------
def _im2col3d(x, k, stride):
    """x: (N, D, H, W, C) -> (N*Do*Ho*Wo, k^3*C); column order (kd, kh, kw, c)."""
    N, D, H, W, C = x.shape
    Do = (D - k) // stride + 1
    Ho = (H - k) // stride + 1
    Wo = (W - k) // stride + 1
    cols = []
    for kd in range(k):
        for kh in range(k):
            for kw in range(k):
                cols.append(
                    x[:,
                      kd:kd + stride * (Do - 1) + 1:stride,
                      kh:kh + stride * (Ho - 1) + 1:stride,
                      kw:kw + stride * (Wo - 1) + 1:stride, :])
    p = jnp.stack(cols, axis=-2)  # (N, Do, Ho, Wo, k^3, C)
    return p.reshape(N * Do * Ho * Wo, k * k * k * C), (Do, Ho, Wo)


# ----------------------------------------------------------------------------
# Forward pass of the innermost UnetSkipConnectionBlock
# ----------------------------------------------------------------------------
def unet_innermost_forward(x_ncdhw, params):
    """x_ncdhw: (N, input_nc, D, H, W) f32 -> (N, input_nc + outer_nc, D, H, W)."""
    N, Cin, D, H, W = x_ncdhw.shape
    w_down, b_down = params["w_down"], params["b_down"]  # Conv3d weights
    w_up, b_up = params["w_up"], params["b_up"]          # ConvTranspose3d weights
    inner_nc = w_down.shape[0]
    outer_nc = w_up.shape[1]

    x_ndhwc = jnp.transpose(x_ncdhw, (0, 2, 3, 4, 1))     # NCDHW -> NDHWC

    # ---- down: Conv3d(k=4, s=2, p=1, bias) of LeakyReLU(0.2)(x).
    #      The up path's leading ReLU is fused into the matmul epilogue.
    x_act = jnp.where(x_ndhwc >= 0, x_ndhwc, 0.2 * x_ndhwc).astype(jnp.bfloat16)
    x_pad = jnp.pad(x_act, ((0, 0), (1, 1), (1, 1), (1, 1), (0, 0)))
    patches, (Do, Ho, Wo) = _im2col3d(x_pad, k=4, stride=2)
    M1 = N * Do * Ho * Wo
    w_down_mat = w_down.transpose(2, 3, 4, 1, 0).reshape(64 * Cin, inner_nc)
    inner = matmul_bias(patches[None], w_down_mat[None], b_down,
                        apply_relu=True, out_dtype=jnp.bfloat16)
    inner = inner[0, :M1, :inner_nc].reshape(N, Do, Ho, Wo, inner_nc)

    # ---- up: ConvTranspose3d(k=4, s=2, p=1, bias) via 8 output-phase stride-1
    #      sub-convolutions of the (already ReLU'd) inner tensor, then BN3d.
    #      Phase (pd,ph,pw): y[2m+pd,...] uses kernel taps (3-pd, 1-pd) per dim.
    inner_pad = jnp.pad(inner, ((0, 0), (1, 1), (1, 1), (1, 1), (0, 0)))
    w_up_flip = jnp.flip(w_up, axis=(2, 3, 4))             # (inner, outer, 4,4,4)
    a_phases, b_phases = [], []
    for pd in (0, 1):
        for ph in (0, 1):
            for pw in (0, 1):
                win = inner_pad[:, pd:pd + Do + 1, ph:ph + Ho + 1,
                                pw:pw + Wo + 1, :]
                a_p, _ = _im2col3d(win, k=2, stride=1)      # (M1, 8*inner_nc)
                a_phases.append(a_p)
                sub = w_up_flip[:, :, pd::2, ph::2, pw::2]  # (inner, outer, 2,2,2)
                b_phases.append(
                    sub.transpose(2, 3, 4, 0, 1).reshape(8 * inner_nc, outer_nc))
    a_all = jnp.stack(a_phases, axis=0)                     # (8, M1, 8*inner_nc)
    b_all = jnp.stack(b_phases, axis=0)                     # (8, 8*inner_nc, outer_nc)
    up = matmul_bias(a_all, b_all, b_up, apply_relu=False,
                     out_dtype=jnp.float32)                 # (8, M1p, Cp)
    Cp = up.shape[-1]
    up = up[:, :M1, :].reshape(2, 2, 2, N, Do, Ho, Wo, Cp)
    up = up.transpose(3, 4, 0, 5, 1, 6, 2, 7).reshape(N, D, H, W, Cp)

    up = batchnorm(up.reshape(N * D * H * W, Cp))           # tiled two-pass BN
    up = up.reshape(N, D, H, W, Cp)[..., :outer_nc]

    # ---- skip: cat([x, model(x)]) channel-last, single final NCDHW transpose.
    #      (PyTorch's in-place LeakyReLU aliasing of the skip tensor is not
    #       reproduced; the skip carries the unmodified input.)
    out = jnp.concatenate([x_ndhwc, up], axis=-1)
    return jnp.transpose(out, (0, 4, 1, 2, 3))


# TODO(synk): outermost / intermediate variants (submodule recursion, dropout,
#             finalconv) not instantiated; the innermost block covers the full
#             down -> up -> skip hot path.


# ----------------------------------------------------------------------------
# Pure-JAX reference (same bf16 cast points, f32 accumulation) for validation
# ----------------------------------------------------------------------------
def _reference_forward(x, params, eps=1e-5):
    w_down, b_down = params["w_down"], params["b_down"]
    w_up, b_up = params["w_up"], params["b_up"]
    dn_in = jnp.where(x >= 0, x, 0.2 * x).astype(jnp.bfloat16)
    dn = jax.lax.conv_general_dilated(
        dn_in, w_down.astype(jnp.bfloat16), window_strides=(2, 2, 2),
        padding=[(1, 1)] * 3, dimension_numbers=("NCDHW", "OIDHW", "NCDHW"),
        preferred_element_type=jnp.float32)
    dn = jnp.maximum(dn + b_down[None, :, None, None, None], 0.0)
    # ConvTranspose3d(k=4, s=2, p=1) == lhs-dilated conv with flipped, swapped w
    w_t = jnp.flip(jnp.transpose(w_up, (1, 0, 2, 3, 4)), axis=(2, 3, 4))
    up = jax.lax.conv_general_dilated(
        dn.astype(jnp.bfloat16), w_t.astype(jnp.bfloat16),
        window_strides=(1, 1, 1), padding=[(2, 2)] * 3, lhs_dilation=(2, 2, 2),
        dimension_numbers=("NCDHW", "OIDHW", "NCDHW"),
        preferred_element_type=jnp.float32)
    up = up + b_up[None, :, None, None, None]
    mean = jnp.mean(up, axis=(0, 2, 3, 4), keepdims=True)
    var = jnp.mean((up - mean) ** 2, axis=(0, 2, 3, 4), keepdims=True)
    up = (up - mean) * jax.lax.rsqrt(var + eps)
    return jnp.concatenate([x, up], axis=1)


# ----------------------------------------------------------------------------
if __name__ == "__main__":
    key = jax.random.PRNGKey(0)
    k_x, k_wd, k_bd, k_wu, k_bu = jax.random.split(key, 5)

    # innermost block: input_nc=None -> input_nc = outer_nc
    N, outer_nc, inner_nc, S = 2, 4, 8, 16
    input_nc = outer_nc

    x = jax.random.normal(k_x, (N, input_nc, S, S, S), dtype=jnp.float32)
    params = {
        # Conv3d(input_nc, inner_nc, k=4, s=2, p=1, bias=True)
        "w_down": 0.05 * jax.random.normal(
            k_wd, (inner_nc, input_nc, 4, 4, 4), jnp.float32),
        "b_down": 0.05 * jax.random.normal(k_bd, (inner_nc,), jnp.float32),
        # ConvTranspose3d(inner_nc, outer_nc, k=4, s=2, p=1, bias=True)
        "w_up": 0.05 * jax.random.normal(
            k_wu, (inner_nc, outer_nc, 4, 4, 4), jnp.float32),
        "b_up": 0.05 * jax.random.normal(k_bu, (outer_nc,), jnp.float32),
    }

    out = jax.jit(unet_innermost_forward)(x, params)
    out = jax.block_until_ready(out)

    expected_shape = (N, input_nc + outer_nc, S, S, S)
    assert out.shape == expected_shape, (out.shape, expected_shape)
    assert bool(jnp.all(jnp.isfinite(out)))

    ref = _reference_forward(x, params)
    max_err = float(jnp.max(jnp.abs(out - ref)))
    assert max_err < 3e-2, f"max abs error vs reference: {max_err}"

    print("KERNEL_OK")
</pallas_src>

<mosaic_0001>
module attributes {stable_mosaic.version = 11 : i64} {
  func.func @_matmul_bias_kernel(%arg0: i32, %arg1: i32, %arg2: i32, %arg3: i32, %arg4: memref<1x256x256xbf16, #tpu.memory_space<vmem>>, %arg5: memref<1x256x128xbf16, #tpu.memory_space<vmem>>, %arg6: memref<1x128xf32, #tpu.memory_space<vmem>>, %arg7: memref<1x256x128xbf16, #tpu.memory_space<vmem>>, %arg8: memref<256x128xf32, #tpu.memory_space<vmem>>) attributes {dimension_semantics = [#tpu.dimension_semantics<parallel>, #tpu.dimension_semantics<parallel>, #tpu.dimension_semantics<parallel>, #tpu.dimension_semantics<arbitrary>], iteration_bounds = array<i64: 1, 4, 1, 1>, scalar_prefetch = 0 : i64, scratch_operands = 1 : i64, tpu.core_type = #tpu.core_type<tc>, window_params = [{transform_indices = @transform_0, window_bounds = array<i64: 1, 256, 256>}, {transform_indices = @transform_1, window_bounds = array<i64: 1, 256, 128>}, {transform_indices = @transform_2, window_bounds = array<i64: 1, 128>}, {transform_indices = @transform_3, window_bounds = array<i64: 1, 256, 128>}]} {
    %c0_i32 = arith.constant 0 : i32
    %0 = arith.cmpi eq, %arg3, %c0_i32 : i32
    %1 = arith.extui %0 : i1 to i32
    %c0_i32_0 = arith.constant 0 : i32
    %2 = arith.cmpi ne, %1, %c0_i32_0 : i32
    scf.if %2 {
      %cst_12 = arith.constant 0.000000e+00 : f32
      %14 = vector.broadcast %cst_12 : f32 to vector<256x128xf32>
      %c0_13 = arith.constant 0 : index
      %c0_14 = arith.constant 0 : index
      %15 = vector.load %arg8[%c0_13, %c0_14] : memref<256x128xf32, #tpu.memory_space<vmem>>, vector<256x128xf32>
      tpu.vector_store %arg8[%c0_13, %c0_14], %14 {strides = array<i32>} : memref<256x128xf32, #tpu.memory_space<vmem>>, vector<256x128xf32>,
    } else {
    }
    %c0 = arith.constant 0 : index
    %c0_1 = arith.constant 0 : index
    %3 = vector.load %arg8[%c0, %c0_1] : memref<256x128xf32, #tpu.memory_space<vmem>>, vector<256x128xf32>
    %c0_2 = arith.constant 0 : index
    %c0_3 = arith.constant 0 : index
    %c0_4 = arith.constant 0 : index
    %4 = vector.load %arg4[%c0_2, %c0_3, %c0_4] : memref<1x256x256xbf16, #tpu.memory_space<vmem>>, vector<1x256x256xbf16>
    %5 = vector.shape_cast %4 : vector<1x256x256xbf16> to vector<256x256xbf16>
    %c0_5 = arith.constant 0 : index
    %c0_6 = arith.constant 0 : index
    %c0_7 = arith.constant 0 : index
    %6 = vector.load %arg5[%c0_5, %c0_6, %c0_7] : memref<1x256x128xbf16, #tpu.memory_space<vmem>>, vector<1x256x128xbf16>
    %7 = vector.shape_cast %6 : vector<1x256x128xbf16> to vector<256x128xbf16>
    %cst = arith.constant dense<0.000000e+00> : vector<256x128xf32>
    %8 = tpu.matmul %5, %7, %cst {dimension_numbers = #tpu.dot_dimension_numbers<[1], [0], [0], [1], [0, 0, 1, 1], [], []>} : vector<256x256xbf16>, vector<256x128xbf16>, vector<256x128xf32> -> vector<256x128xf32>
    %9 = arith.addf %3, %8 : vector<256x128xf32>
    %c0_8 = arith.constant 0 : index
    %c0_9 = arith.constant 0 : index
    %10 = vector.load %arg8[%c0_8, %c0_9] : memref<256x128xf32, #tpu.memory_space<vmem>>, vector<256x128xf32>
    tpu.vector_store %arg8[%c0_8, %c0_9], %9 {strides = array<i32>} : memref<256x128xf32, #tpu.memory_space<vmem>>, vector<256x128xf32>,
    %c0_i32_10 = arith.constant 0 : i32
    %11 = arith.cmpi eq, %arg3, %c0_i32_10 : i32
    %12 = arith.extui %11 : i1 to i32
    %c0_i32_11 = arith.constant 0 : i32
    %13 = arith.cmpi ne, %12, %c0_i32_11 : i32
    scf.if %13 {
      %c0_12 = arith.constant 0 : index
      %c0_13 = arith.constant 0 : index
      %14 = vector.load %arg8[%c0_12, %c0_13] : memref<256x128xf32, #tpu.memory_space<vmem>>, vector<256x128xf32>
      %c0_14 = arith.constant 0 : index
      %c0_15 = arith.constant 0 : index
      %15 = vector.load %arg6[%c0_14, %c0_15] : memref<1x128xf32, #tpu.memory_space<vmem>>, vector<1x128xf32>
      %16 = vector.broadcast %15 : vector<1x128xf32> to vector<256x128xf32>
      %17 = arith.addf %14, %16 : vector<256x128xf32>
      %cst_16 = arith.constant 0.000000e+00 : f32
      %18 = vector.broadcast %cst_16 : f32 to vector<256x128xf32>
      %19 = arith.maximumf %17, %18 : vector<256x128xf32>
      %20 = arith.truncf %19 : vector<256x128xf32> to vector<256x128xbf16>
      %c0_17 = arith.constant 0 : index
      %c0_18 = arith.constant 0 : index
      %c0_19 = arith.constant 0 : index
      %21 = vector.load %arg7[%c0_17, %c0_18, %c0_19] : memref<1x256x128xbf16, #tpu.memory_space<vmem>>, vector<1x256x128xbf16>
      %22 = vector.shape_cast %21 : vector<1x256x128xbf16> to vector<256x128xbf16>
      %23 = vector.shape_cast %20 : vector<256x128xbf16> to vector<1x256x128xbf16>
      tpu.vector_store %arg7[%c0_17, %c0_18, %c0_19], %23 {strides = array<i32>} : memref<1x256x128xbf16, #tpu.memory_space<vmem>>, vector<1x256x128xbf16>,
    } else {
    }
    return
  }
  func.func @transform_0(%arg0: i32, %arg1: i32, %arg2: i32, %arg3: i32) -> (i32, i32, i32) {
    %c0_i32 = arith.constant 0 : i32
    return %arg0, %arg1, %arg3 : i32, i32, i32
  }
  func.func @transform_1(%arg0: i32, %arg1: i32, %arg2: i32, %arg3: i32) -> (i32, i32, i32) {
    %c0_i32 = arith.constant 0 : i32
    return %arg0, %arg3, %arg2 : i32, i32, i32
  }
  func.func @transform_2(%arg0: i32, %arg1: i32, %arg2: i32, %arg3: i32) -> (i32, i32) {
    %c0_i32 = arith.constant 0 : i32
    %c0_i32_0 = arith.constant 0 : i32
    return %c0_i32, %arg2 : i32, i32
  }
  func.func @transform_3(%arg0: i32, %arg1: i32, %arg2: i32, %arg3: i32) -> (i32, i32, i32) {
    %c0_i32 = arith.constant 0 : i32
    return %arg0, %arg1, %arg2 : i32, i32, i32
  }
}

module attributes {stable_mosaic.version = 11 : i64} {
  func.func @_matmul_bias_kernel(%arg0: i32, %arg1: i32, %arg2: i32, %arg3: i32, %arg4: memref<1x256x128xbf16, #tpu.memory_space<vmem>>, %arg5: memref<1x128x128xbf16, #tpu.memory_space<vmem>>, %arg6: memref<1x128xf32, #tpu.memory_space<vmem>>, %arg7: memref<1x256x128xf32, #tpu.memory_space<vmem>>, %arg8: memref<256x128xf32, #tpu.memory_space<vmem>>) attributes {dimension_semantics = [#tpu.dimension_semantics<parallel>, #tpu.dimension_semantics<parallel>, #tpu.dimension_semantics<parallel>, #tpu.dimension_semantics<arbitrary>], iteration_bounds = array<i64: 8, 4, 1, 1>, scalar_prefetch = 0 : i64, scratch_operands = 1 : i64, tpu.core_type = #tpu.core_type<tc>, window_params = [{transform_indices = @transform_0, window_bounds = array<i64: 1, 256, 128>}, {transform_indices = @transform_1, window_bounds = array<i64: 1, 128, 128>}, {transform_indices = @transform_2, window_bounds = array<i64: 1, 128>}, {transform_indices = @transform_3, window_bounds = array<i64: 1, 256, 128>}]} {
    %c0_i32 = arith.constant 0 : i32
    %0 = arith.cmpi eq, %arg3, %c0_i32 : i32
    %1 = arith.extui %0 : i1 to i32
    %c0_i32_0 = arith.constant 0 : i32
    %2 = arith.cmpi ne, %1, %c0_i32_0 : i32
    scf.if %2 {
      %cst_12 = arith.constant 0.000000e+00 : f32
      %14 = vector.broadcast %cst_12 : f32 to vector<256x128xf32>
      %c0_13 = arith.constant 0 : index
      %c0_14 = arith.constant 0 : index
      %15 = vector.load %arg8[%c0_13, %c0_14] : memref<256x128xf32, #tpu.memory_space<vmem>>, vector<256x128xf32>
      tpu.vector_store %arg8[%c0_13, %c0_14], %14 {strides = array<i32>} : memref<256x128xf32, #tpu.memory_space<vmem>>, vector<256x128xf32>,
    } else {
    }
    %c0 = arith.constant 0 : index
    %c0_1 = arith.constant 0 : index
    %3 = vector.load %arg8[%c0, %c0_1] : memref<256x128xf32, #tpu.memory_space<vmem>>, vector<256x128xf32>
    %c0_2 = arith.constant 0 : index
    %c0_3 = arith.constant 0 : index
    %c0_4 = arith.constant 0 : index
    %4 = vector.load %arg4[%c0_2, %c0_3, %c0_4] : memref<1x256x128xbf16, #tpu.memory_space<vmem>>, vector<1x256x128xbf16>
    %5 = vector.shape_cast %4 : vector<1x256x128xbf16> to vector<256x128xbf16>
    %c0_5 = arith.constant 0 : index
    %c0_6 = arith.constant 0 : index
    %c0_7 = arith.constant 0 : index
    %6 = vector.load %arg5[%c0_5, %c0_6, %c0_7] : memref<1x128x128xbf16, #tpu.memory_space<vmem>>, vector<1x128x128xbf16>
    %7 = vector.shape_cast %6 : vector<1x128x128xbf16> to vector<128x128xbf16>
    %cst = arith.constant dense<0.000000e+00> : vector<256x128xf32>
    %8 = tpu.matmul %5, %7, %cst {dimension_numbers = #tpu.dot_dimension_numbers<[1], [0], [0], [1], [0, 0, 1, 1], [], []>} : vector<256x128xbf16>, vector<128x128xbf16>, vector<256x128xf32> -> vector<256x128xf32>
    %9 = arith.addf %3, %8 : vector<256x128xf32>
    %c0_8 = arith.constant 0 : index
    %c0_9 = arith.constant 0 : index
    %10 = vector.load %arg8[%c0_8, %c0_9] : memref<256x128xf32, #tpu.memory_space<vmem>>, vector<256x128xf32>
    tpu.vector_store %arg8[%c0_8, %c0_9], %9 {strides = array<i32>} : memref<256x128xf32, #tpu.memory_space<vmem>>, vector<256x128xf32>,
    %c0_i32_10 = arith.constant 0 : i32
    %11 = arith.cmpi eq, %arg3, %c0_i32_10 : i32
    %12 = arith.extui %11 : i1 to i32
    %c0_i32_11 = arith.constant 0 : i32
    %13 = arith.cmpi ne, %12, %c0_i32_11 : i32
    scf.if %13 {
      %c0_12 = arith.constant 0 : index
      %c0_13 = arith.constant 0 : index
      %14 = vector.load %arg8[%c0_12, %c0_13] : memref<256x128xf32, #tpu.memory_space<vmem>>, vector<256x128xf32>
      %c0_14 = arith.constant 0 : index
      %c0_15 = arith.constant 0 : index
      %15 = vector.load %arg6[%c0_14, %c0_15] : memref<1x128xf32, #tpu.memory_space<vmem>>, vector<1x128xf32>
      %16 = vector.broadcast %15 : vector<1x128xf32> to vector<256x128xf32>
      %17 = arith.addf %14, %16 : vector<256x128xf32>
      %c0_16 = arith.constant 0 : index
      %c0_17 = arith.constant 0 : index
      %c0_18 = arith.constant 0 : index
      %18 = vector.load %arg7[%c0_16, %c0_17, %c0_18] : memref<1x256x128xf32, #tpu.memory_space<vmem>>, vector<1x256x128xf32>
      %19 = vector.shape_cast %18 : vector<1x256x128xf32> to vector<256x128xf32>
      %20 = vector.shape_cast %17 : vector<256x128xf32> to vector<1x256x128xf32>
      tpu.vector_store %arg7[%c0_16, %c0_17, %c0_18], %20 {strides = array<i32>} : memref<1x256x128xf32, #tpu.memory_space<vmem>>, vector<1x256x128xf32>,
    } else {
    }
    return
  }
  func.func @transform_0(%arg0: i32, %arg1: i32, %arg2: i32, %arg3: i32) -> (i32, i32, i32) {
    %c0_i32 = arith.constant 0 : i32
    return %arg0, %arg1, %arg3 : i32, i32, i32
  }
  func.func @transform_1(%arg0: i32, %arg1: i32, %arg2: i32, %arg3: i32) -> (i32, i32, i32) {
    %c0_i32 = arith.constant 0 : i32
    return %arg0, %arg3, %arg2 : i32, i32, i32
  }
  func.func @transform_2(%arg0: i32, %arg1: i32, %arg2: i32, %arg3: i32) -> (i32, i32) {
    %c0_i32 = arith.constant 0 : i32
    %c0_i32_0 = arith.constant 0 : i32
    return %c0_i32, %arg2 : i32, i32
  }
  func.func @transform_3(%arg0: i32, %arg1: i32, %arg2: i32, %arg3: i32) -> (i32, i32, i32) {
    %c0_i32 = arith.constant 0 : i32
    return %arg0, %arg1, %arg2 : i32, i32, i32
  }
}

module attributes {stable_mosaic.version = 11 : i64} {
  func.func @_bn_stats_kernel(%arg0: i32, %arg1: memref<256x128xf32, #tpu.memory_space<vmem>>, %arg2: memref<1x128xf32, #tpu.memory_space<vmem>>, %arg3: memref<1x128xf32, #tpu.memory_space<vmem>>) attributes {dimension_semantics = [#tpu.dimension_semantics<arbitrary>], iteration_bounds = array<i64: 32>, scalar_prefetch = 0 : i64, scratch_operands = 0 : i64, tpu.core_type = #tpu.core_type<tc>, window_params = [{transform_indices = @transform_0, window_bounds = array<i64: 256, 128>}, {pipeline_mode = #tpu.pipeline_mode<synchronous>, transform_indices = @transform_1, window_bounds = array<i64: 1, 128>}, {pipeline_mode = #tpu.pipeline_mode<synchronous>, transform_indices = @transform_2, window_bounds = array<i64: 1, 128>}]} {
    %c0 = arith.constant 0 : index
    %c0_0 = arith.constant 0 : index
    %0 = vector.load %arg1[%c0, %c0_0] : memref<256x128xf32, #tpu.memory_space<vmem>>, vector<256x128xf32>
    %cst = arith.constant dense<0.000000e+00> : vector<128xf32>
    %1 = vector.multi_reduction <add>, %0, %cst [0] : vector<256x128xf32> to vector<128xf32>
    %2 = vector.shape_cast %1 : vector<128xf32> to vector<1x128xf32>
    %3 = arith.mulf %0, %0 : vector<256x128xf32>
    %cst_1 = arith.constant dense<0.000000e+00> : vector<128xf32>
    %4 = vector.multi_reduction <add>, %3, %cst_1 [0] : vector<256x128xf32> to vector<128xf32>
    %5 = vector.shape_cast %4 : vector<128xf32> to vector<1x128xf32>
    %c0_i32 = arith.constant 0 : i32
    %6 = arith.cmpi eq, %arg0, %c0_i32 : i32
    %7 = arith.extui %6 : i1 to i32
    %c0_i32_2 = arith.constant 0 : i32
    %8 = arith.cmpi ne, %7, %c0_i32_2 : i32
    scf.if %8 {
      %c0_5 = arith.constant 0 : index
      %c0_6 = arith.constant 0 : index
      %12 = vector.load %arg2[%c0_5, %c0_6] : memref<1x128xf32, #tpu.memory_space<vmem>>, vector<1x128xf32>
      tpu.vector_store %arg2[%c0_5, %c0_6], %2 {strides = array<i32>} : memref<1x128xf32, #tpu.memory_space<vmem>>, vector<1x128xf32>,
      %c0_7 = arith.constant 0 : index
      %c0_8 = arith.constant 0 : index
      %13 = vector.load %arg3[%c0_7, %c0_8] : memref<1x128xf32, #tpu.memory_space<vmem>>, vector<1x128xf32>
      tpu.vector_store %arg3[%c0_7, %c0_8], %5 {strides = array<i32>} : memref<1x128xf32, #tpu.memory_space<vmem>>, vector<1x128xf32>,
    } else {
    }
    %c0_i32_3 = arith.constant 0 : i32
    %9 = arith.cmpi ne, %arg0, %c0_i32_3 : i32
    %10 = arith.extui %9 : i1 to i32
    %c0_i32_4 = arith.constant 0 : i32
    %11 = arith.cmpi ne, %10, %c0_i32_4 : i32
    scf.if %11 {
      %c0_5 = arith.constant 0 : index
      %c0_6 = arith.constant 0 : index
      %12 = vector.load %arg2[%c0_5, %c0_6] : memref<1x128xf32, #tpu.memory_space<vmem>>, vector<1x128xf32>
      %13 = arith.addf %12, %2 : vector<1x128xf32>
      %c0_7 = arith.constant 0 : index
      %c0_8 = arith.constant 0 : index
      %14 = vector.load %arg2[%c0_7, %c0_8] : memref<1x128xf32, #tpu.memory_space<vmem>>, vector<1x128xf32>
      tpu.vector_store %arg2[%c0_7, %c0_8], %13 {strides = array<i32>} : memref<1x128xf32, #tpu.memory_space<vmem>>, vector<1x128xf32>,
      %c0_9 = arith.constant 0 : index
      %c0_10 = arith.constant 0 : index
      %15 = vector.load %arg3[%c0_9, %c0_10] : memref<1x128xf32, #tpu.memory_space<vmem>>, vector<1x128xf32>
      %16 = arith.addf %15, %5 : vector<1x128xf32>
      %c0_11 = arith.constant 0 : index
      %c0_12 = arith.constant 0 : index
      %17 = vector.load %arg3[%c0_11, %c0_12] : memref<1x128xf32, #tpu.memory_space<vmem>>, vector<1x128xf32>
      tpu.vector_store %arg3[%c0_11, %c0_12], %16 {strides = array<i32>} : memref<1x128xf32, #tpu.memory_space<vmem>>, vector<1x128xf32>,
    } else {
    }
    return
  }
  func.func @transform_0(%arg0: i32) -> (i32, i32) {
    %c0_i32 = arith.constant 0 : i32
    %c0_i32_0 = arith.constant 0 : i32
    return %arg0, %c0_i32 : i32, i32
  }
  func.func @transform_1(%arg0: i32) -> (i32, i32) {
    %c0_i32 = arith.constant 0 : i32
    %c0_i32_0 = arith.constant 0 : i32
    %c0_i32_1 = arith.constant 0 : i32
    return %c0_i32, %c0_i32_0 : i32, i32
  }
  func.func @transform_2(%arg0: i32) -> (i32, i32) {
    %c0_i32 = arith.constant 0 : i32
    %c0_i32_0 = arith.constant 0 : i32
    %c0_i32_1 = arith.constant 0 : i32
    return %c0_i32, %c0_i32_0 : i32, i32
  }
}

module attributes {stable_mosaic.version = 11 : i64} {
  func.func @_bn_norm_kernel(%arg0: i32, %arg1: memref<256x128xf32, #tpu.memory_space<vmem>>, %arg2: memref<1x128xf32, #tpu.memory_space<vmem>>, %arg3: memref<1x128xf32, #tpu.memory_space<vmem>>, %arg4: memref<256x128xf32, #tpu.memory_space<vmem>>) attributes {dimension_semantics = [#tpu.dimension_semantics<parallel>], iteration_bounds = array<i64: 32>, scalar_prefetch = 0 : i64, scratch_operands = 0 : i64, tpu.core_type = #tpu.core_type<tc>, window_params = [{transform_indices = @transform_0, window_bounds = array<i64: 256, 128>}, {pipeline_mode = #tpu.pipeline_mode<synchronous>, transform_indices = @transform_1, window_bounds = array<i64: 1, 128>}, {pipeline_mode = #tpu.pipeline_mode<synchronous>, transform_indices = @transform_2, window_bounds = array<i64: 1, 128>}, {transform_indices = @transform_3, window_bounds = array<i64: 256, 128>}]} {
    %c0 = arith.constant 0 : index
    %c0_0 = arith.constant 0 : index
    %0 = vector.load %arg1[%c0, %c0_0] : memref<256x128xf32, #tpu.memory_space<vmem>>, vector<256x128xf32>
    %c0_1 = arith.constant 0 : index
    %c0_2 = arith.constant 0 : index
    %1 = vector.load %arg2[%c0_1, %c0_2] : memref<1x128xf32, #tpu.memory_space<vmem>>, vector<1x128xf32>
    %2 = vector.broadcast %1 : vector<1x128xf32> to vector<256x128xf32>
    %3 = arith.mulf %0, %2 : vector<256x128xf32>
    %c0_3 = arith.constant 0 : index
    %c0_4 = arith.constant 0 : index
    %4 = vector.load %arg3[%c0_3, %c0_4] : memref<1x128xf32, #tpu.memory_space<vmem>>, vector<1x128xf32>
    %5 = vector.broadcast %4 : vector<1x128xf32> to vector<256x128xf32>
    %6 = arith.addf %3, %5 : vector<256x128xf32>
    %c0_5 = arith.constant 0 : index
    %c0_6 = arith.constant 0 : index
    %7 = vector.load %arg4[%c0_5, %c0_6] : memref<256x128xf32, #tpu.memory_space<vmem>>, vector<256x128xf32>
    tpu.vector_store %arg4[%c0_5, %c0_6], %6 {strides = array<i32>} : memref<256x128xf32, #tpu.memory_space<vmem>>, vector<256x128xf32>,
    return
  }
  func.func @transform_0(%arg0: i32) -> (i32, i32) {
    %c0_i32 = arith.constant 0 : i32
    %c0_i32_0 = arith.constant 0 : i32
    return %arg0, %c0_i32 : i32, i32
  }
  func.func @transform_1(%arg0: i32) -> (i32, i32) {
    %c0_i32 = arith.constant 0 : i32
    %c0_i32_0 = arith.constant 0 : i32
    %c0_i32_1 = arith.constant 0 : i32
    return %c0_i32, %c0_i32_0 : i32, i32
  }
  func.func @transform_2(%arg0: i32) -> (i32, i32) {
    %c0_i32 = arith.constant 0 : i32
    %c0_i32_0 = arith.constant 0 : i32
    %c0_i32_1 = arith.constant 0 : i32
    return %c0_i32, %c0_i32_0 : i32, i32
  }
  func.func @transform_3(%arg0: i32) -> (i32, i32) {
    %c0_i32 = arith.constant 0 : i32
    %c0_i32_0 = arith.constant 0 : i32
    return %arg0, %c0_i32 : i32, i32
  }
}

</mosaic_0001>

<bundles_post_ra>
// kernel: unet_innermost_forward.4
= control target key start
LH: loop header
LB: loop body
LE: loop exit
PB: predicated region body
PF: predicated region fallthrough
CT: control target
= control target key end

     0   :  { %s1820_s12 = smov 0   ;;  %s1822_s13 = smov 0   ;;  %s1994_s0 = inlined_call_operand.vmem [shape: bf16[1,1024,256], index: 0, kind: input, shape index: {}]   ;;  %s1995_s1 = inlined_call_operand.vmem [shape: bf16[1,256,128], index: 1, kind: input, shape index: {}]   ;;  %s1996_s2 = inlined_call_operand.vmem [shape: f32[1,128], index: 2, kind: input, shape index: {}]   ;;  %s1997_s3 = inlined_call_operand.vmem [shape: bf16[1,1024,128], index: 3, kind: output, shape index: {}]  }
   0x1   :  { %s1824_s14 = smov 0  }
   0x2 LB: > { %s35_s15 = sadd.s32 1, %s1794_s13  ;;  %p1343_p0 = scmp.ge.s32.totalorder %s1798_s14, 1  ;;  %s1798_s14 = sphi %s1824_s14, %s13_s14   ;;  %s1794_s13 = sphi %s1822_s13, %s1999_s13   ;;  %s1790_s12 = sphi %s1820_s12, %s1998_s12  }
   0x3   : > { %p37_p1 = scmp.ge.s32.totalorder %s35_s15, 4  ;;  %p212_p2 = scmp.lt.s32.totalorder %s1798_s14, 5 }
   0x5   : > { %s2001_s15 = smov (%p37_p1, %s35_s15), 0  ;;  %p213_p3 = pnand %p1343_p0, %p212_p2 }
   0x6   : > { %s1344_s18 = sshll.u32 (!%p213_p3), %s1790_s12, 5 }
   0x7   : > { %216 = sbr.rel (%p213_p3) target bundleno = 309 (0x135), region = 32  ;;  %p271_p4 = scmp.lt.s32.totalorder (!%p213_p3), %s1344_s18, 127 }
   0xc   : > { %v1712_v0 = vld [vmem:[%s1995_s1 + $0x78] sm:$0xff]   ;;  %v1714_v2 = vld [vmem:[%s1995_s1 + $0x70] sm:$0xff]   ;;  %v1716_v4 = vld [vmem:[%s1995_s1 + $0x68] sm:$0xff]   ;;  %s2003_s18 = smov (!%p271_p4, %s1344_s18), 127 }
   0xd   : > { %v1713_v1 = vld [vmem:[%s1995_s1 + $0x38] sm:$0xff]   ;;  %1560 = vmatprep.subr.bf16.mxu0 %v1712_v0  ;;  %1672 = vmatprep.subr.bf16.mxu1 %v1712_v0  ;;  %v1715_v3 = vld [vmem:[%s1995_s1 + $0x30] sm:$0xff]   ;;  %v1717_v5 = vld [vmem:[%s1995_s1 + $0x28] sm:$0xff]   ;;  %s1432_s6 = sshll.u32 %s2003_s18, 3  ;;  %s1348_s5 = sshll.u32 %s2003_s18, 2 }
   0xe   : > { %1561 = vmatpush3.bf16.msra.mxu0 %v1713_v1  ;;  %1680 = vmatpush3.bf16.msra.mxu1 %v1713_v1  ;;  %v1718_v6 = vld [vmem:[%s1995_s1 + $0x60] sm:$0xff]   ;;  %v1720_v8 = vld [vmem:[%s1995_s1 + $0x58] sm:$0xff]   ;;  %s1871_s11 = scalar_lea.vmem %s1994_s0, %s1432_s6  ;;  %v1722_v10 = vld [vmem:[%s1995_s1 + $0x50] sm:$0xff]   ;;  %s1939_s8 = scalar_lea.vmem %s1997_s3, %s1348_s5 }
   0xf   : > { %1562 = vmatprep.subr.bf16.mxu0 %v1714_v2  ;;  %1673 = vmatprep.subr.bf16.mxu1 %v1714_v2  ;;  %v1719_v7 = vld [vmem:[%s1995_s1 + $0x20] sm:$0xff]   ;;  %v1721_v9 = vld [vmem:[%s1995_s1 + $0x18] sm:$0xff]   ;;  %v1723_v13 = vld [vmem:[%s1995_s1 + $0x10] sm:$0xff]  }
  0x10   : > { %v1730_v11 = vld [vmem:[%s1871_s11 + $0x4] ss:$8 sps:$4 sm:$0xff]   ;;  %v1728_v18 = vld [vmem:[%s1871_s11] ss:$8 sps:$4 sm:$0xff]   ;;  %v1734_v20 = vld [vmem:[%s1871_s11 + $0x14] ss:$8 sps:$4 sm:$0xff]  }
  0x11   : > { %v1733_v12 = vld [vmem:[%s1871_s11 + $0x84] ss:$8 sps:$4 sm:$0xff]   ;;  %733 = vmatprep.mubr.bf16.mxu0 %v1730_v11  ;;  %v1731_v19 = vld [vmem:[%s1871_s11 + $0x80] ss:$8 sps:$4 sm:$0xff]   ;;  %v1736_v21 = vld [vmem:[%s1871_s11 + $0x94] ss:$8 sps:$4 sm:$0xff]  }
  0x12   : > { %1563 = vmatpush3.bf16.msra.mxu0 %v1715_v3  ;;  %1681 = vmatpush3.bf16.msra.mxu1 %v1715_v3  ;;  %v1724_v14 = vld [vmem:[%s1995_s1 + $0x48] sm:$0xff]   ;;  %v1726_v16 = vld [vmem:[%s1995_s1 + $0x40] sm:$0xff]   ;;  %v1738_v22 = vld [vmem:[%s1871_s11 + $0x10] ss:$8 sps:$4 sm:$0xff]  }
  0x13   : > { %1564 = vmatprep.subr.bf16.mxu0 %v1716_v4  ;;  %1674 = vmatprep.subr.bf16.mxu1 %v1716_v4  ;;  %v1725_v15 = vld [vmem:[%s1995_s1 + $0x8] sm:$0xff]   ;;  %v1727_v17 = vld [vmem:[%s1995_s1] sm:$0xff]   ;;  %v1739_v23 = vld [vmem:[%s1871_s11 + $0x90] ss:$8 sps:$4 sm:$0xff]  }
  0x14   : > { %797 = vmatprep.mubr.bf16.mxu1 %v1733_v12  ;;  %v1740_v24 = vld [vmem:[%s1871_s11 + $0x24] ss:$8 sps:$4 sm:$0xff]   ;;  %v1744_v26 = vld [vmem:[%s1871_s11 + $0x20] ss:$8 sps:$4 sm:$0xff]   ;;  %v1746_v28 = vld [vmem:[%s1871_s11 + $0x34] ss:$8 sps:$4 sm:$0xff]  }
  0x15   : > { %v1742_v25 = vld [vmem:[%s1871_s11 + $0xa4] ss:$8 sps:$4 sm:$0xff]   ;;  %v1745_v27 = vld [vmem:[%s1871_s11 + $0xa0] ss:$8 sps:$4 sm:$0xff]   ;;  %v1748_v29 = vld [vmem:[%s1871_s11 + $0xb4] ss:$8 sps:$4 sm:$0xff]  }
  0x16   : > { %1565 = vmatpush3.bf16.msra.mxu0 %v1717_v5  ;;  %1682 = vmatpush3.bf16.msra.mxu1 %v1717_v5  ;;  %v1750_v30 = vld [vmem:[%s1871_s11 + $0x30] ss:$8 sps:$4 sm:$0xff]   ;;  %v1752_v32 = vld [vmem:[%s1871_s11 + $0x44] ss:$8 sps:$4 sm:$0xff]   ;;  %v1756_v34 = vld [vmem:[%s1871_s11 + $0x40] ss:$8 sps:$4 sm:$0xff]  }
  0x17   : > { %1566 = vmatprep.subr.bf16.mxu0 %v1718_v6  ;;  %1675 = vmatprep.subr.bf16.mxu1 %v1718_v6  ;;  %v1751_v31 = vld [vmem:[%s1871_s11 + $0xb0] ss:$8 sps:$4 sm:$0xff]   ;;  %v1754_v33 = vld [vmem:[%s1871_s11 + $0xc4] ss:$8 sps:$4 sm:$0xff]   ;;  %v1757_v35 = vld [vmem:[%s1871_s11 + $0xc0] ss:$8 sps:$4 sm:$0xff]  }
  0x18   : > { %v1758_v36 = vld [vmem:[%s1871_s11 + $0x54] ss:$8 sps:$4 sm:$0xff]   ;;  %v1762_v38 = vld [vmem:[%s1871_s11 + $0x50] ss:$8 sps:$4 sm:$0xff]   ;;  %v1764_v40 = vld [vmem:[%s1871_s11 + $0x64] ss:$8 sps:$4 sm:$0xff]  }
  0x19   : > { %v1760_v37 = vld [vmem:[%s1871_s11 + $0xd4] ss:$8 sps:$4 sm:$0xff]   ;;  %v1763_v39 = vld [vmem:[%s1871_s11 + $0xd0] ss:$8 sps:$4 sm:$0xff]   ;;  %v1766_v41 = vld [vmem:[%s1871_s11 + $0xe4] ss:$8 sps:$4 sm:$0xff]  }
  0x1a   : > { %1567 = vmatpush3.bf16.msra.mxu0 %v1719_v7  ;;  %1683 = vmatpush3.bf16.msra.mxu1 %v1719_v7  ;;  %v1768_v42 = vld [vmem:[%s1871_s11 + $0x60] ss:$8 sps:$4 sm:$0xff]   ;;  %v1770_v44 = vld [vmem:[%s1871_s11 + $0x74] ss:$8 sps:$4 sm:$0xff]   ;;  %v1774_v46 = vld [vmem:[%s1871_s11 + $0x70] ss:$8 sps:$4 sm:$0xff]  }
  0x1b   : > { %1568 = vmatprep.subr.bf16.mxu0 %v1720_v8  ;;  %1676 = vmatprep.subr.bf16.mxu1 %v1720_v8  ;;  %v1769_v43 = vld [vmem:[%s1871_s11 + $0xe0] ss:$8 sps:$4 sm:$0xff]   ;;  %v1772_v45 = vld [vmem:[%s1871_s11 + $0xf4] ss:$8 sps:$4 sm:$0xff]   ;;  %v1775_v47 = vld [vmem:[%s1871_s11 + $0xf0] ss:$8 sps:$4 sm:$0xff]  }
  0x1c   : > { %v1929_v53 = vld [vmem:[%s1996_s2] ss:$0 sm:$0xff] }
  0x1e   : > { %1569 = vmatpush3.bf16.msra.mxu0 %v1721_v9  ;;  %1684 = vmatpush3.bf16.msra.mxu1 %v1721_v9 }
  0x1f   : > { %1570 = vmatprep.subr.bf16.mxu0 %v1722_v10  ;;  %1677 = vmatprep.subr.bf16.mxu1 %v1722_v10 }
  0x22   : > { %1571 = vmatpush3.bf16.msra.mxu0 %v1723_v13  ;;  %1685 = vmatpush3.bf16.msra.mxu1 %v1723_v13 }
  0x23   : > { %1572 = vmatprep.subr.bf16.mxu0 %v1724_v14  ;;  %1678 = vmatprep.subr.bf16.mxu1 %v1724_v14 }
  0x26   : > { %1573 = vmatpush3.bf16.msra.mxu0 %v1725_v15  ;;  %1686 = vmatpush3.bf16.msra.mxu1 %v1725_v15 }
  0x27   : > { %1574 = vmatprep.subr.bf16.mxu0 %v1726_v16  ;;  %1679 = vmatprep.subr.bf16.mxu1 %v1726_v16 }
  0x2a   : > { %1575 = vmatpush3.bf16.msra.mxu0 %v1727_v17  ;;  %1687 = vmatpush3.bf16.msra.mxu1 %v1727_v17 }
  0x2d   : > { %734 = vmatmul.mubr.bf16.vlgmr.msra.gmra.mxu0 %v1728_v18  ;;  %798 = vmatmul.mubr.bf16.vlgmr.msra.gmra.mxu1 %v1731_v19 }
  0x2e   : > { %741 = vmatprep.mubr.bf16.mxu0 %v1734_v20  ;;  %805 = vmatprep.mubr.bf16.mxu1 %v1736_v21 }
  0x35   : > { %742 = vmatmul.mubr.bf16.gmra.mxu0 %v1738_v22  ;;  %806 = vmatmul.mubr.bf16.gmra.mxu1 %v1739_v23 }
  0x36   : > { %749 = vmatprep.mubr.bf16.mxu0 %v1740_v24  ;;  %813 = vmatprep.mubr.bf16.mxu1 %v1742_v25 }
  0x3d   : > { %750 = vmatmul.mubr.bf16.gmra.mxu0 %v1744_v26  ;;  %814 = vmatmul.mubr.bf16.gmra.mxu1 %v1745_v27 }
  0x3e   : > { %757 = vmatprep.mubr.bf16.mxu0 %v1746_v28  ;;  %821 = vmatprep.mubr.bf16.mxu1 %v1748_v29 }
  0x45   : > { %758 = vmatmul.mubr.bf16.gmra.mxu0 %v1750_v30  ;;  %822 = vmatmul.mubr.bf16.gmra.mxu1 %v1751_v31 }
  0x46   : > { %765 = vmatprep.mubr.bf16.mxu0 %v1752_v32  ;;  %829 = vmatprep.mubr.bf16.mxu1 %v1754_v33 }
  0x4d   : > { %766 = vmatmul.mubr.bf16.gmra.mxu0 %v1756_v34  ;;  %830 = vmatmul.mubr.bf16.gmra.mxu1 %v1757_v35 }
  0x4e   : > { %773 = vmatprep.mubr.bf16.mxu0 %v1758_v36  ;;  %837 = vmatprep.mubr.bf16.mxu1 %v1760_v37 }
  0x55   : > { %774 = vmatmul.mubr.bf16.gmra.mxu0 %v1762_v38  ;;  %838 = vmatmul.mubr.bf16.gmra.mxu1 %v1763_v39 }
  0x56   : > { %781 = vmatprep.mubr.bf16.mxu0 %v1764_v40  ;;  %845 = vmatprep.mubr.bf16.mxu1 %v1766_v41 }
  0x5d   : > { %782 = vmatmul.mubr.bf16.gmra.mxu0 %v1768_v42  ;;  %846 = vmatmul.mubr.bf16.gmra.mxu1 %v1769_v43 }
  0x5e   : > { %789 = vmatprep.mubr.bf16.mxu0 %v1770_v44  ;;  %853 = vmatprep.mubr.bf16.mxu1 %v1772_v45 }
  0x65   : > { %790 = vmatmul.mubr.bf16.gmra.mxu0 %v1774_v46  ;;  %854 = vmatmul.mubr.bf16.gmra.mxu1 %v1775_v47 }
  0xed   : > { %v1576_v48 = vpop.f32.mrf.mxu0  ;;  %v1624_v49 = vpop.f32.mrf.mxu1 }
  0xef   : > { %v1577_v50 = vpop.f32.mrf.mxu0  ;;  %v1625_v51 = vpop.f32.mrf.mxu1 }
  0xf0   : > { %v1578_v52 = vadd.f32 %v1577_v50, %v1576_v48  ;;  %v1626_v54 = vadd.f32 %v1625_v51, %v1624_v49 }
  0xf1   : > { %v1579_v55 = vpop.f32.mrf.mxu0  ;;  %v1627_v56 = vpop.f32.mrf.mxu1 }
  0xf2   : > { %v968_v57 = vadd.f32 %v1578_v52, %v1929_v53  ;;  %v984_v58 = vadd.f32 %v1626_v54, %v1929_v53 }
  0xf3   : > { %v1580_v59 = vpop.f32.mrf.mxu0  ;;  %v1628_v60 = vpop.f32.mrf.mxu1 }
  0xf4   : > { %v1581_v61 = vadd.f32 %v1580_v59, %v1579_v55  ;;  %v1629_v62 = vadd.f32 %v1628_v60, %v1627_v56  ;;  %v1000_v3 = vmax.f32 %v968_v57, 0.0  ;;  %v1016_v4 = vmax.f32 %v984_v58, 0.0 }
  0xf5   : > { %v1582_v63 = vpop.f32.mrf.mxu0  ;;  %v1630_v0 = vpop.f32.mrf.mxu1 }
  0xf6   : > { %v969_v1 = vadd.f32 %v1581_v61, %v1929_v53  ;;  %v985_v2 = vadd.f32 %v1629_v62, %v1929_v53 }
  0xf7   : > { %v1583_v5 = vpop.f32.mrf.mxu0  ;;  %v1631_v6 = vpop.f32.mrf.mxu1 }
  0xf8   : > { %v1001_v7 = vmax.f32 %v969_v1, 0.0  ;;  %v1017_v8 = vmax.f32 %v985_v2, 0.0  ;;  %v1584_v9 = vadd.f32 %v1583_v5, %v1582_v63  ;;  %v1632_v10 = vadd.f32 %v1631_v6, %v1630_v0 }
  0xf9   : > { %v1585_v11 = vpop.f32.mrf.mxu0  ;;  %v1633_v12 = vpop.f32.mrf.mxu1 }
  0xfa   : > { %v1468_v13 = vpack.c.bf16 %v1001_v7, %v1000_v3  ;;  %v1508_v14 = vpack.c.bf16 %v1017_v8, %v1016_v4  ;;  %v970_v15 = vadd.f32 %v1584_v9, %v1929_v53  ;;  %v986_v16 = vadd.f32 %v1632_v10, %v1929_v53 }
  0xfb   : > { %v1586_v17 = vpop.f32.mrf.mxu0  ;;  %v1634_v18 = vpop.f32.mrf.mxu1 }
  0xfc   : > { %1469 = vst [vmem:[%s1939_s8] sm:$0xff] %v1468_v13   ;;  %1552 = vst [vmem:[%s1939_s8 + $0x40] sm:$0xff] %v1508_v14   ;;  %v1587_v19 = vadd.f32 %v1586_v17, %v1585_v11  ;;  %v1635_v20 = vadd.f32 %v1634_v18, %v1633_v12  ;;  %v1002_v25 = vmax.f32 %v970_v15, 0.0  ;;  %v1018_v26 = vmax.f32 %v986_v16, 0.0 }
  0xfd   : > { %v1588_v21 = vpop.f32.mrf.mxu0  ;;  %v1636_v22 = vpop.f32.mrf.mxu1 }
  0xfe   : > { %v971_v23 = vadd.f32 %v1587_v19, %v1929_v53  ;;  %v987_v24 = vadd.f32 %v1635_v20, %v1929_v53 }
  0xff   : > { %v1589_v27 = vpop.f32.mrf.mxu0  ;;  %v1637_v28 = vpop.f32.mrf.mxu1 }
 0x100   : > { %v1003_v29 = vmax.f32 %v971_v23, 0.0  ;;  %v1019_v30 = vmax.f32 %v987_v24, 0.0  ;;  %v1590_v31 = vadd.f32 %v1589_v27, %v1588_v21  ;;  %v1638_v32 = vadd.f32 %v1637_v28, %v1636_v22 }
 0x101   : > { %v1591_v33 = vpop.f32.mrf.mxu0  ;;  %v1639_v34 = vpop.f32.mrf.mxu1 }
 0x102   : > { %v1473_v35 = vpack.c.bf16 %v1003_v29, %v1002_v25  ;;  %v1513_v36 = vpack.c.bf16 %v1019_v30, %v1018_v26  ;;  %v972_v37 = vadd.f32 %v1590_v31, %v1929_v53  ;;  %v988_v38 = vadd.f32 %v1638_v32, %v1929_v53 }
 0x103   : > { %v1592_v39 = vpop.f32.mrf.mxu0  ;;  %v1640_v40 = vpop.f32.mrf.mxu1 }
 0x104   : > { %1545 = vst [vmem:[%s1939_s8 + $0x8] sm:$0xff] %v1473_v35   ;;  %1553 = vst [vmem:[%s1939_s8 + $0x48] sm:$0xff] %v1513_v36   ;;  %v1593_v41 = vadd.f32 %v1592_v39, %v1591_v33  ;;  %v1641_v42 = vadd.f32 %v1640_v40, %v1639_v34  ;;  %v1004_v47 = vmax.f32 %v972_v37, 0.0  ;;  %v1020_v48 = vmax.f32 %v988_v38, 0.0 }
 0x105   : > { %v1594_v43 = vpop.f32.mrf.mxu0  ;;  %v1642_v44 = vpop.f32.mrf.mxu1 }
 0x106   : > { %v973_v45 = vadd.f32 %v1593_v41, %v1929_v53  ;;  %v989_v46 = vadd.f32 %v1641_v42, %v1929_v53 }
 0x107   : > { %v1595_v49 = vpop.f32.mrf.mxu0  ;;  %v1643_v50 = vpop.f32.mrf.mxu1 }
 0x108   : > { %v1005_v51 = vmax.f32 %v973_v45, 0.0  ;;  %v1021_v52 = vmax.f32 %v989_v46, 0.0  ;;  %v1596_v54 = vadd.f32 %v1595_v49, %v1594_v43  ;;  %v1644_v55 = vadd.f32 %v1643_v50, %v1642_v44 }
 0x109   : > { %v1597_v56 = vpop.f32.mrf.mxu0  ;;  %v1645_v57 = vpop.f32.mrf.mxu1 }
 0x10a   : > { %v1478_v58 = vpack.c.bf16 %v1005_v51, %v1004_v47  ;;  %v1518_v59 = vpack.c.bf16 %v1021_v52, %v1020_v48  ;;  %v974_v60 = vadd.f32 %v1596_v54, %v1929_v53  ;;  %v990_v61 = vadd.f32 %v1644_v55, %v1929_v53 }
 0x10b   : > { %v1598_v62 = vpop.f32.mrf.mxu0  ;;  %v1646_v63 = vpop.f32.mrf.mxu1 }
 0x10c   : > { %1546 = vst [vmem:[%s1939_s8 + $0x10] sm:$0xff] %v1478_v58   ;;  %1554 = vst [vmem:[%s1939_s8 + $0x50] sm:$0xff] %v1518_v59   ;;  %v1599_v0 = vadd.f32 %v1598_v62, %v1597_v56  ;;  %v1647_v1 = vadd.f32 %v1646_v63, %v1645_v57  ;;  %v1006_v6 = vmax.f32 %v974_v60, 0.0  ;;  %v1022_v7 = vmax.f32 %v990_v61, 0.0 }
 0x10d   : > { %v1600_v2 = vpop.f32.mrf.mxu0  ;;  %v1648_v3 = vpop.f32.mrf.mxu1 }
 0x10e   : > { %v975_v4 = vadd.f32 %v1599_v0, %v1929_v53  ;;  %v991_v5 = vadd.f32 %v1647_v1, %v1929_v53 }
 0x10f   : > { %v1601_v8 = vpop.f32.mrf.mxu0  ;;  %v1649_v9 = vpop.f32.mrf.mxu1 }
 0x110   : > { %v1007_v10 = vmax.f32 %v975_v4, 0.0  ;;  %v1023_v11 = vmax.f32 %v991_v5, 0.0  ;;  %v1602_v12 = vadd.f32 %v1601_v8, %v1600_v2  ;;  %v1650_v13 = vadd.f32 %v1649_v9, %v1648_v3 }
 0x111   : > { %v1603_v14 = vpop.f32.mrf.mxu0  ;;  %v1651_v15 = vpop.f32.mrf.mxu1 }
 0x112   : > { %v1483_v16 = vpack.c.bf16 %v1007_v10, %v1006_v6  ;;  %v1523_v17 = vpack.c.bf16 %v1023_v11, %v1022_v7  ;;  %v976_v18 = vadd.f32 %v1602_v12, %v1929_v53  ;;  %v992_v19 = vadd.f32 %v1650_v13, %v1929_v53 }
 0x113   : > { %v1604_v20 = vpop.f32.mrf.mxu0  ;;  %v1652_v21 = vpop.f32.mrf.mxu1 }
 0x114   : > { %1547 = vst [vmem:[%s1939_s8 + $0x18] sm:$0xff] %v1483_v16   ;;  %1555 = vst [vmem:[%s1939_s8 + $0x58] sm:$0xff] %v1523_v17   ;;  %v1605_v22 = vadd.f32 %v1604_v20, %v1603_v14  ;;  %v1653_v23 = vadd.f32 %v1652_v21, %v1651_v15  ;;  %v1008_v28 = vmax.f32 %v976_v18, 0.0  ;;  %v1024_v29 = vmax.f32 %v992_v19, 0.0 }
 0x115   : > { %v1606_v24 = vpop.f32.mrf.mxu0  ;;  %v1654_v25 = vpop.f32.mrf.mxu1 }
 0x116   : > { %v977_v26 = vadd.f32 %v1605_v22, %v1929_v53  ;;  %v993_v27 = vadd.f32 %v1653_v23, %v1929_v53 }
 0x117   : > { %v1607_v30 = vpop.f32.mrf.mxu0  ;;  %v1655_v31 = vpop.f32.mrf.mxu1 }
 0x118   : > { %v1009_v32 = vmax.f32 %v977_v26, 0.0  ;;  %v1025_v33 = vmax.f32 %v993_v27, 0.0  ;;  %v1608_v34 = vadd.f32 %v1607_v30, %v1606_v24  ;;  %v1656_v35 = vadd.f32 %v1655_v31, %v1654_v25 }
 0x119   : > { %v1609_v36 = vpop.f32.mrf.mxu0  ;;  %v1657_v37 = vpop.f32.mrf.mxu1 }
 0x11a   : > { %v1488_v38 = vpack.c.bf16 %v1009_v32, %v1008_v28  ;;  %v1528_v39 = vpack.c.bf16 %v1025_v33, %v1024_v29  ;;  %v978_v40 = vadd.f32 %v1608_v34, %v1929_v53  ;;  %v994_v41 = vadd.f32 %v1656_v35, %v1929_v53 }
 0x11b   : > { %v1610_v42 = vpop.f32.mrf.mxu0  ;;  %v1658_v43 = vpop.f32.mrf.mxu1 }
 0x11c   : > { %1548 = vst [vmem:[%s1939_s8 + $0x20] sm:$0xff] %v1488_v38   ;;  %1556 = vst [vmem:[%s1939_s8 + $0x60] sm:$0xff] %v1528_v39   ;;  %v1611_v44 = vadd.f32 %v1610_v42, %v1609_v36  ;;  %v1659_v45 = vadd.f32 %v1658_v43, %v1657_v37  ;;  %v1010_v50 = vmax.f32 %v978_v40, 0.0  ;;  %v1026_v51 = vmax.f32 %v994_v41, 0.0 }
 0x11d   : > { %v1612_v46 = vpop.f32.mrf.mxu0  ;;  %v1660_v47 = vpop.f32.mrf.mxu1 }
 0x11e   : > { %v979_v48 = vadd.f32 %v1611_v44, %v1929_v53  ;;  %v995_v49 = vadd.f32 %v1659_v45, %v1929_v53 }
 0x11f   : > { %v1613_v52 = vpop.f32.mrf.mxu0  ;;  %v1661_v54 = vpop.f32.mrf.mxu1 }
 0x120   : > { %v1011_v55 = vmax.f32 %v979_v48, 0.0  ;;  %v1027_v56 = vmax.f32 %v995_v49, 0.0  ;;  %v1614_v57 = vadd.f32 %v1613_v52, %v1612_v46  ;;  %v1662_v58 = vadd.f32 %v1661_v54, %v1660_v47 }
 0x121   : > { %v1615_v59 = vpop.f32.mrf.mxu0  ;;  %v1663_v60 = vpop.f32.mrf.mxu1 }
 0x122   : > { %v1493_v61 = vpack.c.bf16 %v1011_v55, %v1010_v50  ;;  %v1533_v62 = vpack.c.bf16 %v1027_v56, %v1026_v51  ;;  %v980_v63 = vadd.f32 %v1614_v57, %v1929_v53  ;;  %v996_v0 = vadd.f32 %v1662_v58, %v1929_v53 }
 0x123   : > { %v1616_v1 = vpop.f32.mrf.mxu0  ;;  %v1664_v2 = vpop.f32.mrf.mxu1 }
 0x124   : > { %1549 = vst [vmem:[%s1939_s8 + $0x28] sm:$0xff] %v1493_v61   ;;  %1557 = vst [vmem:[%s1939_s8 + $0x68] sm:$0xff] %v1533_v62   ;;  %v1617_v3 = vadd.f32 %v1616_v1, %v1615_v59  ;;  %v1665_v4 = vadd.f32 %v1664_v2, %v1663_v60  ;;  %v1012_v9 = vmax.f32 %v980_v63, 0.0  ;;  %v1028_v10 = vmax.f32 %v996_v0, 0.0 }
 0x125   : > { %v1618_v5 = vpop.f32.mrf.mxu0  ;;  %v1666_v6 = vpop.f32.mrf.mxu1 }
 0x126   : > { %v981_v7 = vadd.f32 %v1617_v3, %v1929_v53  ;;  %v997_v8 = vadd.f32 %v1665_v4, %v1929_v53 }
 0x127   : > { %v1619_v11 = vpop.f32.mrf.mxu0  ;;  %v1667_v12 = vpop.f32.mrf.mxu1 }
 0x128   : > { %v1013_v13 = vmax.f32 %v981_v7, 0.0  ;;  %v1029_v14 = vmax.f32 %v997_v8, 0.0  ;;  %v1620_v15 = vadd.f32 %v1619_v11, %v1618_v5  ;;  %v1668_v16 = vadd.f32 %v1667_v12, %v1666_v6 }
 0x129   : > { %v1621_v17 = vpop.f32.mrf.mxu0  ;;  %v1669_v18 = vpop.f32.mrf.mxu1 }
 0x12a   : > { %v1498_v19 = vpack.c.bf16 %v1013_v13, %v1012_v9  ;;  %v1538_v20 = vpack.c.bf16 %v1029_v14, %v1028_v10  ;;  %v982_v23 = vadd.f32 %v1620_v15, %v1929_v53  ;;  %v998_v24 = vadd.f32 %v1668_v16, %v1929_v53 }
 0x12b   : > { %v1622_v21 = vpop.f32.mrf.mxu0  ;;  %v1670_v22 = vpop.f32.mrf.mxu1 }
 0x12c   : > { %1550 = vst [vmem:[%s1939_s8 + $0x30] sm:$0xff] %v1498_v19   ;;  %1558 = vst [vmem:[%s1939_s8 + $0x70] sm:$0xff] %v1538_v20   ;;  %v1623_v25 = vadd.f32 %v1622_v21, %v1621_v17  ;;  %v1671_v26 = vadd.f32 %v1670_v22, %v1669_v18  ;;  %v1014_v29 = vmax.f32 %v982_v23, 0.0  ;;  %v1030_v30 = vmax.f32 %v998_v24, 0.0 }
 0x12e   : > { %v983_v27 = vadd.f32 %v1623_v25, %v1929_v53  ;;  %v999_v28 = vadd.f32 %v1671_v26, %v1929_v53 }
 0x130   : > { %v1015_v31 = vmax.f32 %v983_v27, 0.0  ;;  %v1031_v32 = vmax.f32 %v999_v28, 0.0 }
 0x132   : > { %v1503_v33 = vpack.c.bf16 %v1015_v31, %v1014_v29  ;;  %v1543_v34 = vpack.c.bf16 %v1031_v32, %v1030_v30 }
 0x134   : > { %1551 = vst [vmem:[%s1939_s8 + $0x38] sm:$0xff] %v1503_v33   ;;  %1559 = vst [vmem:[%s1939_s8 + $0x78] sm:$0xff] %v1543_v34  }
 0x135 PF: > { %s13_s14 = sadd.s32 1, %s1798_s14   ;;  %s1998_s12 = smov %s1794_s13 }
 0x136   : > { %p10_p5 = scmp.ge.s32.totalorder %s13_s14, 6   ;;  %s1999_s13 = smov %s2001_s15 }
 0x138   :  { %12 = sbr.rel (!%p10_p5) target bundleno = 2 (0x2), region = 76 }

// kernel: reverse
= control target key start
LH: loop header
LB: loop body
LE: loop exit
PB: predicated region body
PF: predicated region fallthrough
CT: control target
= control target key end

     0   :  { %v135_v16 = vld [vmem:[#allocation1 + $0x1e] sm:$0x1]  ;;  %v167_v17 = vld [vmem:[#allocation1 + $0x1c] sm:$0x1]  ;;  %v199_v20 = vld [vmem:[#allocation1 + $0x1a] sm:$0x1]  ;;  %v625_v59 = vlaneseq  ;;  %s1185_s0 = inlined_call_operand.vmem [shape: bf16[8,4,2,2,2], index: 0, kind: input, shape index: {}]   ;;  %s1186_s1 = inlined_call_operand.vmem [shape: bf16[8,4,2,2,2], index: 1, kind: output, shape index: {}]  }
   0x1   :  { %v19_v0 = vld [vmem:[%s1185_s0] sm:$0x1]  ;;  %v21_v1 = vld [vmem:[%s1185_s0 + $0x1] sm:$0x1]  ;;  %v23_v2 = vld [vmem:[%s1185_s0 + $0x2] sm:$0x1]  ;;  %v136_v18 = vunpack.c.l.bf16 %v135_v16  ;;  %v168_v19 = vunpack.c.l.bf16 %v167_v17  ;;  %v200_v23 = vunpack.c.l.bf16 %v199_v20 }
   0x2   :  { %20 = vst [vmem:[#allocation1 + $0x1] sm:$0x1] %v19_v0  ;;  %22 = vst [vmem:[#allocation1 + $0x3] sm:$0x1] %v21_v1  ;;  %v25_v3 = vld [vmem:[%s1185_s0 + $0x3] sm:$0x1] }
   0x3   :  { %24 = vst [vmem:[#allocation1 + $0x5] sm:$0x1] %v23_v2  ;;  %v27_v4 = vld [vmem:[%s1185_s0 + $0x4] sm:$0x1]  ;;  %v29_v5 = vld [vmem:[%s1185_s0 + $0x5] sm:$0x1] }
   0x4   :  { %26 = vst [vmem:[#allocation1 + $0x7] sm:$0x1] %v25_v3  ;;  %28 = vst [vmem:[#allocation1 + $0x9] sm:$0x1] %v27_v4  ;;  %v31_v6 = vld [vmem:[%s1185_s0 + $0x6] sm:$0x1] }
   0x5   :  { %30 = vst [vmem:[#allocation1 + $0xb] sm:$0x1] %v29_v5  ;;  %v33_v7 = vld [vmem:[%s1185_s0 + $0x7] sm:$0x1]  ;;  %v35_v8 = vld [vmem:[%s1185_s0 + $0x8] sm:$0x1] }
   0x6   :  { %32 = vst [vmem:[#allocation1 + $0xd] sm:$0x1] %v31_v6  ;;  %34 = vst [vmem:[#allocation1 + $0xf] sm:$0x1] %v33_v7  ;;  %v37_v9 = vld [vmem:[%s1185_s0 + $0x9] sm:$0x1] }
   0x7   :  { %36 = vst [vmem:[#allocation1 + $0x11] sm:$0x1] %v35_v8  ;;  %v39_v10 = vld [vmem:[%s1185_s0 + $0xa] sm:$0x1]  ;;  %v41_v11 = vld [vmem:[%s1185_s0 + $0xb] sm:$0x1] }
   0x8   :  { %38 = vst [vmem:[#allocation1 + $0x13] sm:$0x1] %v37_v9  ;;  %40 = vst [vmem:[#allocation1 + $0x15] sm:$0x1] %v39_v10  ;;  %v43_v12 = vld [vmem:[%s1185_s0 + $0xc] sm:$0x1] }
   0x9   :  { %42 = vst [vmem:[#allocation1 + $0x17] sm:$0x1] %v41_v11  ;;  %v45_v13 = vld [vmem:[%s1185_s0 + $0xd] sm:$0x1]  ;;  %v47_v14 = vld [vmem:[%s1185_s0 + $0xe] sm:$0x1] }
   0xa   :  { %44 = vst [vmem:[#allocation1 + $0x19] sm:$0x1] %v43_v12  ;;  %46 = vst [vmem:[#allocation1 + $0x1b] sm:$0x1] %v45_v13  ;;  %v49_v15 = vld [vmem:[%s1185_s0 + $0xf] sm:$0x1] }
   0xb   :  { %48 = vst [vmem:[#allocation1 + $0x1d] sm:$0x1] %v47_v14  ;;  %50 = vst [vmem:[#allocation1 + $0x1f] sm:$0x1] %v49_v15  ;;  %v231_v21 = vld [vmem:[#allocation1 + $0x18] sm:$0x1] }
   0xc   :  { %v263_v22 = vld [vmem:[#allocation1 + $0x16] sm:$0x1]  ;;  %v232_v24 = vunpack.c.l.bf16 %v231_v21  ;;  %v295_v26 = vld [vmem:[#allocation1 + $0x14] sm:$0x1]  ;;  %v327_v27 = vld [vmem:[#allocation1 + $0x12] sm:$0x1] }
   0xd   :  { %v264_v25 = vunpack.c.l.bf16 %v263_v22  ;;  %v359_v28 = vld [vmem:[#allocation1 + $0x10] sm:$0x1]  ;;  %139 = vst [vmem:[#allocation0 + $0xf0] sm:$0x3] %v136_v18  ;;  %171 = vst [vmem:[#allocation0 + $0xe0] sm:$0x3] %v168_v19  ;;  %v296_v29 = vunpack.c.l.bf16 %v295_v26  ;;  %v328_v30 = vunpack.c.l.bf16 %v327_v27 }
   0xe   :  { %v360_v31 = vunpack.c.l.bf16 %v359_v28  ;;  %v391_v32 = vld [vmem:[#allocation1 + $0xe] sm:$0x1]  ;;  %v423_v33 = vld [vmem:[#allocation1 + $0xc] sm:$0x1]  ;;  %v455_v34 = vld [vmem:[#allocation1 + $0xa] sm:$0x1] }
   0xf   :  { %203 = vst [vmem:[#allocation0 + $0xd0] sm:$0x3] %v200_v23  ;;  %235 = vst [vmem:[#allocation0 + $0xc0] sm:$0x3] %v232_v24  ;;  %v392_v35 = vunpack.c.l.bf16 %v391_v32  ;;  %v424_v36 = vunpack.c.l.bf16 %v423_v33  ;;  %v439_v37 = vld [vmem:[#allocation1 + $0xb] sm:$0x1]  ;;  %v456_v38 = vunpack.c.l.bf16 %v455_v34 }
  0x10   :  { %267 = vst [vmem:[#allocation0 + $0xb0] sm:$0x3] %v264_v25  ;;  %v471_v39 = vld [vmem:[#allocation1 + $0x9] sm:$0x1]  ;;  %v487_v40 = vld [vmem:[#allocation1 + $0x8] sm:$0x1]  ;;  %v440_v44 = vunpack.c.l.bf16 %v439_v37 }
  0x11   :  { %299 = vst [vmem:[#allocation0 + $0xa0] sm:$0x3] %v296_v29  ;;  %331 = vst [vmem:[#allocation0 + $0x90] sm:$0x3] %v328_v30  ;;  %v343_v41 = vld [vmem:[#allocation1 + $0x11] sm:$0x1]  ;;  %v472_v45 = vunpack.c.l.bf16 %v471_v39  ;;  %v488_v46 = vunpack.c.l.bf16 %v487_v40 }
  0x12   :  { %363 = vst [vmem:[#allocation0 + $0x80] sm:$0x3] %v360_v31  ;;  %v375_v42 = vld [vmem:[#allocation1 + $0xf] sm:$0x1]  ;;  %v407_v43 = vld [vmem:[#allocation1 + $0xd] sm:$0x1]  ;;  %v344_v50 = vunpack.c.l.bf16 %v343_v41 }
  0x13   :  { %v247_v47 = vld [vmem:[#allocation1 + $0x17] sm:$0x1]  ;;  %v279_v48 = vld [vmem:[#allocation1 + $0x15] sm:$0x1]  ;;  %v311_v49 = vld [vmem:[#allocation1 + $0x13] sm:$0x1]  ;;  %v376_v51 = vunpack.c.l.bf16 %v375_v42  ;;  %v408_v52 = vunpack.c.l.bf16 %v407_v43 }
  0x14   :  { %395 = vst [vmem:[#allocation0 + $0x70] sm:$0x3] %v392_v35  ;;  %427 = vst [vmem:[#allocation0 + $0x60] sm:$0x3] %v424_v36  ;;  %v151_v53 = vld [vmem:[#allocation1 + $0x1d] sm:$0x1]  ;;  %v248_v56 = vunpack.c.l.bf16 %v247_v47  ;;  %v280_v57 = vunpack.c.l.bf16 %v279_v48  ;;  %v312_v58 = vunpack.c.l.bf16 %v311_v49 }
  0x15   :  { %459 = vst [vmem:[#allocation0 + $0x50] sm:$0x3] %v456_v38  ;;  %v183_v54 = vld [vmem:[#allocation1 + $0x1b] sm:$0x1]  ;;  %v215_v55 = vld [vmem:[#allocation1 + $0x19] sm:$0x1]  ;;  %v152_v61 = vunpack.c.l.bf16 %v151_v53 }
  0x16   :  { %443 = vst [vmem:[#allocation0 + $0x58] sm:$0x3] %v440_v44  ;;  %475 = vst [vmem:[#allocation0 + $0x48] sm:$0x3] %v472_v45  ;;  %v119_v60 = vld [vmem:[#allocation1 + $0x1f] sm:$0x1]  ;;  %v184_v62 = vunpack.c.l.bf16 %v183_v54  ;;  %v216_v63 = vunpack.c.l.bf16 %v215_v55 }
  0x17   :  { %491 = vst [vmem:[#allocation0 + $0x40] sm:$0x3] %v488_v46  ;;  %347 = vst [vmem:[#allocation0 + $0x88] sm:$0x3] %v344_v50  ;;  %v503_v0 = vld [vmem:[#allocation1 + $0x7] sm:$0x1]  ;;  %v120_v2 = vunpack.c.l.bf16 %v119_v60 }
  0x18   :  { %379 = vst [vmem:[#allocation0 + $0x78] sm:$0x3] %v376_v51  ;;  %411 = vst [vmem:[#allocation0 + $0x68] sm:$0x3] %v408_v52  ;;  %v519_v1 = vld [vmem:[#allocation1 + $0x6] sm:$0x1]  ;;  %v504_v3 = vunpack.c.l.bf16 %v503_v0 }
  0x19   :  { %251 = vst [vmem:[#allocation0 + $0xb8] sm:$0x3] %v248_v56  ;;  %283 = vst [vmem:[#allocation0 + $0xa8] sm:$0x3] %v280_v57  ;;  %v520_v4 = vunpack.c.l.bf16 %v519_v1  ;;  %v535_v5 = vld [vmem:[#allocation1 + $0x5] sm:$0x1] }
  0x1a   :  { %315 = vst [vmem:[#allocation0 + $0x98] sm:$0x3] %v312_v58  ;;  %v551_v6 = vld [vmem:[#allocation1 + $0x4] sm:$0x1]  ;;  %v567_v7 = vld [vmem:[#allocation1 + $0x3] sm:$0x1]  ;;  %v536_v8 = vunpack.c.l.bf16 %v535_v5 }
  0x1b   :  { %155 = vst [vmem:[#allocation0 + $0xe8] sm:$0x3] %v152_v61  ;;  %187 = vst [vmem:[#allocation0 + $0xd8] sm:$0x3] %v184_v62  ;;  %v552_v9 = vunpack.c.l.bf16 %v551_v6  ;;  %v568_v10 = vunpack.c.l.bf16 %v567_v7  ;;  %v583_v11 = vld [vmem:[#allocation1 + $0x2] sm:$0x1] }
  0x1c   :  { %219 = vst [vmem:[#allocation0 + $0xc8] sm:$0x3] %v216_v63  ;;  %v598_v12 = vld [vmem:[#allocation1 + $0x1] sm:$0x1]  ;;  %v612_v13 = vld [vmem:[#allocation1] sm:$0x1]  ;;  %v584_v14 = vunpack.c.l.bf16 %v583_v11 }
  0x1d   :  { %123 = vst [vmem:[#allocation0 + $0xf8] sm:$0x3] %v120_v2  ;;  %507 = vst [vmem:[#allocation0 + $0x38] sm:$0x3] %v504_v3  ;;  %v599_v15 = vunpack.c.l.bf16 %v598_v12  ;;  %v613_v16 = vunpack.c.l.bf16 %v612_v13  ;;  %v1144_v17 = vshrl.u32 %v625_v59, 7 }
  0x1e   :  { %523 = vst [vmem:[#allocation0 + $0x30] sm:$0x3] %v520_v4  ;;  %v729_v18 = vld [vmem:[#allocation0 + $0xb7] ss:$-1 sm:$0xff]  ;;  %539 = vst [vmem:[#allocation0 + $0x28] sm:$0x3] %v536_v8 }
  0x1f   :  { %v785_v19 = vld [vmem:[#allocation0 + $0xf7] ss:$-1 sm:$0xff]  ;;  %555 = vst [vmem:[#allocation0 + $0x20] sm:$0x3] %v552_v9  ;;  %571 = vst [vmem:[#allocation0 + $0x18] sm:$0x3] %v568_v10 }
  0x20   :  { %v730_v20 = vrot.slane %v729_v18, 6  ;;  %v743_v21 = vld [vmem:[#allocation0 + $0xa7] ss:$-1 sm:$0xff]  ;;  %v786_v22 = vrot.slane %v785_v19, 6  ;;  %587 = vst [vmem:[#allocation0 + $0x10] sm:$0x3] %v584_v14 }
  0x21   :  { %602 = vst [vmem:[#allocation0 + $0x8] sm:$0x3] %v599_v15  ;;  %615 = vst [vmem:[#allocation0] sm:$0x3] %v613_v16  ;;  %vm627_vm0 = vcmp.lt.s32.totalorder %v1144_v17, 2  ;;  %v744_v25 = vrot.slane %v743_v21, 6 }
  0x22   :  { %v673_v23 = vld [vmem:[#allocation0 + $0x77] ss:$-1 sm:$0xff]  ;;  %v687_v24 = vld [vmem:[#allocation0 + $0x67] ss:$-1 sm:$0xff]  ;;  %v706_v29 = vld [vmem:[#allocation0 + $0x5f] ss:$-1 sm:$0xff] }
  0x23   :  { %v674_v26 = vrot.slane %v673_v23, 6  ;;  %v688_v27 = vrot.slane %v687_v24, 6  ;;  %v701_v28 = vld [vmem:[#allocation0 + $0x57] ss:$-1 sm:$0xff]  ;;  %731 = vst [vmem:[#allocation2 + $0x40] sm:$0xff] %v730_v20  ;;  %787 = vst [vmem:[#allocation2 + $0x60] sm:$0xff] %v786_v22 }
  0x24   :  { %v678_v30 = vld [vmem:[#allocation0 + $0x7f] ss:$-1 sm:$0xff]  ;;  %v692_v31 = vld [vmem:[#allocation0 + $0x6f] ss:$-1 sm:$0xff]  ;;  %v702_v32 = vrot.slane %v701_v28, 6  ;;  %v707_v33 = vrot.slane %v706_v29, 6 }
  0x25   :  { %745 = vst [vmem:[#allocation2 + $0x48] sm:$0xff] %v744_v25  ;;  %675 = vst [vmem:[#allocation2 + $0x20] sm:$0xff] %v674_v26  ;;  %v679_v34 = vrot.slane %v678_v30, 6  ;;  %v693_v35 = vrot.slane %v692_v31, 6  ;;  %v715_v36 = vld [vmem:[#allocation0 + $0x47] ss:$-1 sm:$0xff] }
  0x26   :  { %689 = vst [vmem:[#allocation2 + $0x28] sm:$0xff] %v688_v27  ;;  %v720_v37 = vld [vmem:[#allocation0 + $0x4f] ss:$-1 sm:$0xff]  ;;  %703 = vst [vmem:[#allocation2 + $0x30] sm:$0xff] %v702_v32  ;;  %v716_v38 = vrot.slane %v715_v36, 6  ;;  %v1085_v20 = vmov 0.0  }
  0x27   :  { %v721_v39 = vrot.slane %v720_v37, 6  ;;  %v734_v40 = vld [vmem:[#allocation0 + $0xbf] ss:$-1 sm:$0xff]  ;;  %v748_v41 = vld [vmem:[#allocation0 + $0xaf] ss:$-1 sm:$0xff]  ;;  %683 = vst.msk [vmem:[#allocation2 + $0x20] sm:$0xff] %vm627_vm0, %v679_v34 }
  0x28   :  { %v757_v42 = vld [vmem:[#allocation0 + $0x97] ss:$-1 sm:$0xff]  ;;  %v623_v44 = vld [vmem:[#allocation0 + $0x3f] ss:$-1 sm:$0xff]  ;;  %697 = vst.msk [vmem:[#allocation2 + $0x28] sm:$0xff] %vm627_vm0, %v693_v35  ;;  %711 = vst.msk [vmem:[#allocation2 + $0x30] sm:$0xff] %vm627_vm0, %v707_v33 }
  0x29   :  { %v618_v43 = vld [vmem:[#allocation0 + $0x37] ss:$-1 sm:$0xff]  ;;  %v735_v45 = vrot.slane %v734_v40, 6  ;;  %v749_v46 = vrot.slane %v748_v41, 6  ;;  %v624_v48 = vrot.slane %v623_v44, 6  ;;  %717 = vst [vmem:[#allocation2 + $0x38] sm:$0xff] %v716_v38 }
  0x2a   :  { %v619_v47 = vrot.slane %v618_v43, 6  ;;  %v632_v49 = vld [vmem:[#allocation0 + $0x27] ss:$-1 sm:$0xff]  ;;  %v637_v50 = vld [vmem:[#allocation0 + $0x2f] ss:$-1 sm:$0xff]  ;;  %725 = vst.msk [vmem:[#allocation2 + $0x38] sm:$0xff] %vm627_vm0, %v721_v39 }
  0x2b   :  { %v633_v51 = vrot.slane %v632_v49, 6  ;;  %v638_v52 = vrot.slane %v637_v50, 6  ;;  %v646_v53 = vld [vmem:[#allocation0 + $0x17] ss:$-1 sm:$0xff]  ;;  %v651_v54 = vld [vmem:[#allocation0 + $0x1f] ss:$-1 sm:$0xff] }
  0x2c   :  { %739 = vst.msk [vmem:[#allocation2 + $0x40] sm:$0xff] %vm627_vm0, %v735_v45  ;;  %753 = vst.msk [vmem:[#allocation2 + $0x48] sm:$0xff] %vm627_vm0, %v749_v46  ;;  %v647_v55 = vrot.slane %v646_v53, 6  ;;  %v652_v56 = vrot.slane %v651_v54, 6  ;;  %v659_v57 = vld [vmem:[#allocation0 + $0x7] ss:$-1 sm:$0xff] }
  0x2d   :  { %620 = vst [vmem:[#allocation2] sm:$0xff] %v619_v47  ;;  %v664_v58 = vld [vmem:[#allocation0 + $0xf] ss:$-1 sm:$0xff]  ;;  %634 = vst [vmem:[#allocation2 + $0x8] sm:$0xff] %v633_v51  ;;  %v660_v59 = vrot.slane %v659_v57, 6  ;;  %v758_v61 = vrot.slane %v757_v42, 6 }
  0x2e   :  { %628 = vst.msk [vmem:[#allocation2] sm:$0xff] %vm627_vm0, %v624_v48  ;;  %v665_v60 = vrot.slane %v664_v58, 6  ;;  %v762_v62 = vld [vmem:[#allocation0 + $0x9f] ss:$-1 sm:$0xff]  ;;  %642 = vst.msk [vmem:[#allocation2 + $0x8] sm:$0xff] %vm627_vm0, %v638_v52 }
  0x2f   :  { %648 = vst [vmem:[#allocation2 + $0x10] sm:$0xff] %v647_v55  ;;  %v763_v63 = vrot.slane %v762_v62, 6  ;;  %v771_v0 = vld [vmem:[#allocation0 + $0x87] ss:$-1 sm:$0xff]  ;;  %v776_v1 = vld [vmem:[#allocation0 + $0x8f] ss:$-1 sm:$0xff] }
  0x30   :  { %656 = vst.msk [vmem:[#allocation2 + $0x10] sm:$0xff] %vm627_vm0, %v652_v56  ;;  %661 = vst [vmem:[#allocation2 + $0x18] sm:$0xff] %v660_v59  ;;  %v772_v2 = vrot.slane %v771_v0, 6  ;;  %v777_v3 = vrot.slane %v776_v1, 6  ;;  %v790_v4 = vld [vmem:[#allocation0 + $0xff] ss:$-1 sm:$0xff] }
  0x31   :  { %759 = vst [vmem:[#allocation2 + $0x50] sm:$0xff] %v758_v61  ;;  %v799_v5 = vld [vmem:[#allocation0 + $0xe7] ss:$-1 sm:$0xff]  ;;  %669 = vst.msk [vmem:[#allocation2 + $0x18] sm:$0xff] %vm627_vm0, %v665_v60  ;;  %v791_v6 = vrot.slane %v790_v4, 6 }
  0x32   :  { %767 = vst.msk [vmem:[#allocation2 + $0x50] sm:$0xff] %vm627_vm0, %v763_v63  ;;  %v800_v7 = vrot.slane %v799_v5, 6  ;;  %v804_v8 = vld [vmem:[#allocation0 + $0xef] ss:$-1 sm:$0xff]  ;;  %v813_v9 = vld [vmem:[#allocation0 + $0xd7] ss:$-1 sm:$0xff] }
  0x33   :  { %773 = vst [vmem:[#allocation2 + $0x58] sm:$0xff] %v772_v2  ;;  %v805_v10 = vrot.slane %v804_v8, 6  ;;  %v814_v11 = vrot.slane %v813_v9, 6  ;;  %v818_v12 = vld [vmem:[#allocation0 + $0xdf] ss:$-1 sm:$0xff]  ;;  %795 = vst.msk [vmem:[#allocation2 + $0x60] sm:$0xff] %vm627_vm0, %v791_v6 }
  0x34   :  { %v827_v13 = vld [vmem:[#allocation0 + $0xc7] ss:$-1 sm:$0xff]  ;;  %781 = vst.msk [vmem:[#allocation2 + $0x58] sm:$0xff] %vm627_vm0, %v777_v3  ;;  %801 = vst [vmem:[#allocation2 + $0x68] sm:$0xff] %v800_v7  ;;  %v819_v14 = vrot.slane %v818_v12, 6 }
  0x35   :  { %v828_v15 = vrot.slane %v827_v13, 6  ;;  %v832_v16 = vld [vmem:[#allocation0 + $0xcf] ss:$-1 sm:$0xff]  ;;  %v872_v18 = vld [vmem:[#allocation2 + $0x20] sm:$0x3]  ;;  %809 = vst.msk [vmem:[#allocation2 + $0x68] sm:$0xff] %vm627_vm0, %v805_v10 }
  0x36   :  { %815 = vst [vmem:[#allocation2 + $0x70] sm:$0xff] %v814_v11  ;;  %v833_v19 = vrot.slane %v832_v16, 6  ;;  %v873_v21 = vpack.c.bf16 %v1085_v20, %v872_v18  ;;  %v880_v22 = vld [vmem:[#allocation2 + $0x28] sm:$0x3]  ;;  %v888_v23 = vld [vmem:[#allocation2 + $0x30] sm:$0x3] }
  0x37   :  { %823 = vst.msk [vmem:[#allocation2 + $0x70] sm:$0xff] %vm627_vm0, %v819_v14  ;;  %829 = vst [vmem:[#allocation2 + $0x78] sm:$0xff] %v828_v15  ;;  %v843_v24 = vld [vmem:[#allocation2] sm:$0x3]  ;;  %v881_v25 = vpack.c.bf16 %v1085_v20, %v880_v22  ;;  %v889_v26 = vpack.c.bf16 %v1085_v20, %v888_v23  ;;  %v896_v27 = vld [vmem:[#allocation2 + $0x38] sm:$0x3] }
  0x38   :  { %v904_v28 = vld [vmem:[#allocation2 + $0x40] sm:$0x3]  ;;  %837 = vst.msk [vmem:[#allocation2 + $0x78] sm:$0xff] %vm627_vm0, %v833_v19  ;;  %v844_v17 = vpack.c.bf16 %v1085_v20, %v843_v24  ;;  %v849_v29 = vld [vmem:[#allocation2 + $0x8] sm:$0x3]  ;;  %v897_v30 = vpack.c.bf16 %v1085_v20, %v896_v27 }
  0x39   :  { %878 = vst [vmem:[#allocation3 + $0x4] sm:$0x1] %v873_v21  ;;  %v905_v31 = vpack.c.bf16 %v1085_v20, %v904_v28  ;;  %v912_v32 = vld [vmem:[#allocation2 + $0x48] sm:$0x3]  ;;  %v850_v33 = vpack.c.bf16 %v1085_v20, %v849_v29  ;;  %v856_v34 = vld [vmem:[#allocation2 + $0x10] sm:$0x3] }
  0x3a   :  { %886 = vst [vmem:[#allocation3 + $0x5] sm:$0x1] %v881_v25  ;;  %894 = vst [vmem:[#allocation3 + $0x6] sm:$0x1] %v889_v26  ;;  %v913_v35 = vpack.c.bf16 %v1085_v20, %v912_v32  ;;  %v857_v36 = vpack.c.bf16 %v1085_v20, %v856_v34  ;;  %v864_v37 = vld [vmem:[#allocation2 + $0x18] sm:$0x3] }
  0x3b   :  { %847 = vst [vmem:[#allocation3] sm:$0x1] %v844_v17  ;;  %902 = vst [vmem:[#allocation3 + $0x7] sm:$0x1] %v897_v30  ;;  %v920_v38 = vld [vmem:[#allocation2 + $0x50] sm:$0x3]  ;;  %v865_v39 = vpack.c.bf16 %v1085_v20, %v864_v37 }
  0x3c   :  { %910 = vst [vmem:[#allocation3 + $0x8] sm:$0x1] %v905_v31  ;;  %854 = vst [vmem:[#allocation3 + $0x1] sm:$0x1] %v850_v33  ;;  %v921_v40 = vpack.c.bf16 %v1085_v20, %v920_v38  ;;  %v928_v41 = vld [vmem:[#allocation2 + $0x58] sm:$0x3] }
  0x3d   :  { %918 = vst [vmem:[#allocation3 + $0x9] sm:$0x1] %v913_v35  ;;  %862 = vst [vmem:[#allocation3 + $0x2] sm:$0x1] %v857_v36  ;;  %v936_v42 = vld [vmem:[#allocation2 + $0x60] sm:$0x3]  ;;  %v929_v43 = vpack.c.bf16 %v1085_v20, %v928_v41 }
  0x3e   :  { %870 = vst [vmem:[#allocation3 + $0x3] sm:$0x1] %v865_v39  ;;  %926 = vst [vmem:[#allocation3 + $0xa] sm:$0x1] %v921_v40  ;;  %v937_v44 = vpack.c.bf16 %v1085_v20, %v936_v42  ;;  %v944_v45 = vld [vmem:[#allocation2 + $0x68] sm:$0x3] }
  0x3f   :  { %v945_v46 = vpack.c.bf16 %v1085_v20, %v944_v45  ;;  %v952_v47 = vld [vmem:[#allocation2 + $0x70] sm:$0x3]  ;;  %934 = vst [vmem:[#allocation3 + $0xb] sm:$0x1] %v929_v43  ;;  %v960_v49 = vld [vmem:[#allocation2 + $0x78] sm:$0x3] }
  0x40   :  { %942 = vst [vmem:[#allocation3 + $0xc] sm:$0x1] %v937_v44  ;;  %v953_v48 = vpack.c.bf16 %v1085_v20, %v952_v47  ;;  %v961_v50 = vpack.c.bf16 %v1085_v20, %v960_v49 }
  0x41   :  { %950 = vst [vmem:[#allocation3 + $0xd] sm:$0x1] %v945_v46 }
  0x42   :  { %958 = vst [vmem:[#allocation3 + $0xe] sm:$0x1] %v953_v48  ;;  %966 = vst [vmem:[#allocation3 + $0xf] sm:$0x1] %v961_v50 }
  0x45   :  { %v979_v51 = vld [vmem:[#allocation3] sm:$0xff] }
  0x46   :  { %980 = vst [vmem:[%s1186_s1] sm:$0xff] %v979_v51 }
  0x49   :  { %v981_v52 = vld [vmem:[#allocation3 + $0x8] sm:$0xff] }
  0x4a   :  { %982 = vst [vmem:[%s1186_s1 + $0x8] sm:$0xff] %v981_v52 }

// kernel: unet_innermost_forward.5
= control target key start
LH: loop header
LB: loop body
LE: loop exit
PB: predicated region body
PF: predicated region fallthrough
CT: control target
= control target key end

     0   :  { %s1292_s12 = smov 0   ;;  %s1294_s13 = smov 0   ;;  %s1449_s0 = inlined_call_operand.vmem [shape: bf16[8,1024,128], index: 0, kind: input, shape index: {}]   ;;  %s1450_s1 = inlined_call_operand.vmem [shape: bf16[8,128,128], index: 1, kind: input, shape index: {}]   ;;  %s1451_s2 = inlined_call_operand.vmem [shape: f32[1,128], index: 2, kind: input, shape index: {}]   ;;  %s1452_s3 = inlined_call_operand.vmem [shape: f32[8,1024,128], index: 3, kind: output, shape index: {}]  }
   0x1   :  { %s1296_s14 = smov 0   ;;  %s1298_s15 = smov 0  }
   0x2   :  { %s1300_s16 = smov 0  }
   0x3 LB: > { %s35_s17 = sadd.s32 1, %s1262_s14  ;;  %s39_s18 = sadd.s32 1, %s1266_s15  ;;  %s1270_s16 = sphi %s1300_s16, %s13_s16   ;;  %s1266_s15 = sphi %s1298_s15, %s1456_s15   ;;  %s1262_s14 = sphi %s1296_s14, %s1455_s14   ;;  %s1258_s13 = sphi %s1294_s13, %s1454_s13   ;;  %s1254_s12 = sphi %s1292_s12, %s1453_s12  }
   0x4   : > { %p37_p0 = scmp.ge.s32.totalorder %s35_s17, 4  ;;  %p1043_p1 = scmp.ge.s32.totalorder %s1270_s16, 1 }
   0x5   : > { %p209_p2 = scmp.lt.s32.totalorder %s1270_s16, 33 }
   0x6   : > { %s1458_s17 = smov (%p37_p0, %s35_s17), 0  ;;  %s1460_s18 = smov (!%p37_p0, %s39_s18), %s1266_s15 }
   0x7   : > { %p210_p3 = pnand %p1043_p1, %p209_p2  ;;  %p41_p4 = scmp.ge.s32.totalorder %s1460_s18, 8 }
   0x8   : > { %s1044_s19 = sshll.u32 (!%p210_p3), %s1254_s12, 5  ;;  %p263_p5 = scmp.lt.s32.totalorder (!%p210_p3), %s1258_s13, 7 }
   0x9   : > { %s1462_s18 = smov (%p41_p4, %s1460_s18), 0  ;;  %213 = sbr.rel (%p210_p3) target bundleno = 276 (0x114), region = 32 }
   0xa   : > { %p265_p6 = scmp.lt.s32.totalorder (!%p210_p3), %s1044_s19, 127 }
   0xe   : > { %s1464_s13 = smov (!%p263_p5, %s1258_s13), 7  ;;  %s1466_s19 = smov (!%p265_p6, %s1044_s19), 127  ;;  %v1363_v24 = vld [vmem:[%s1451_s2] ss:$0 sm:$0xff] }
   0xf   : > { %s1045_s20 = sshll.u32 %s1464_s13, 7  ;;  %s1079_s21 = sshll.u32 %s1464_s13, 6 }
  0x10   : > { %s1325_s24 = scalar_lea.vmem %s1450_s1, %s1079_s21  ;;  %s1327_s25 = sadd.s32 %s1045_s20, %s1466_s19 }
  0x11   : > { %v1208_v0 = vld [vmem:[%s1325_s24 + $0x38] sm:$0xff]   ;;  %v1209_v1 = vld [vmem:[%s1325_s24 + $0x30] sm:$0xff]   ;;  %s1046_s26 = sshll.u32 %s1327_s25, 2  ;;  %v1210_v2 = vld [vmem:[%s1325_s24 + $0x28] sm:$0xff]   ;;  %s1051_s30 = sshll.u32 %s1327_s25, 3 }
  0x12   : > { %1104 = vmatprep.subr.bf16.mxu0 %v1208_v0  ;;  %1152 = vmatprep.subr.bf16.mxu1 %v1208_v0  ;;  %s1336_s29 = scalar_lea.vmem %s1449_s0, %s1046_s26  ;;  %v1211_v3 = vld [vmem:[%s1325_s24 + $0x20] sm:$0xff]   ;;  %v1212_v6 = vld [vmem:[%s1325_s24 + $0x18] sm:$0xff]   ;;  %v1213_v7 = vld [vmem:[%s1325_s24 + $0x10] sm:$0xff]   ;;  %s1368_s8 = scalar_lea.vmem %s1452_s3, %s1051_s30 }
  0x13   : > { %1105 = vmatpush3.bf16.msra.mxu0 %v1208_v0  ;;  %1160 = vmatpush3.bf16.msra.mxu1 %v1208_v0  ;;  %v1216_v4 = vld [vmem:[%s1336_s29] sm:$0xff]   ;;  %v1214_v8 = vld [vmem:[%s1325_s24 + $0x8] sm:$0xff]   ;;  %v1220_v12 = vld [vmem:[%s1336_s29 + $0x10] sm:$0xff]  }
  0x14   : > { %1106 = vmatprep.subr.bf16.mxu0 %v1209_v1  ;;  %1153 = vmatprep.subr.bf16.mxu1 %v1209_v1  ;;  %v1217_v5 = vld [vmem:[%s1336_s29 + $0x40] sm:$0xff]   ;;  %v1218_v10 = vld [vmem:[%s1336_s29 + $0x8] sm:$0xff]   ;;  %v1221_v13 = vld [vmem:[%s1336_s29 + $0x50] sm:$0xff]  }
  0x15   : > { %1120 = vmatprep.mubr.bf16.mxu0 %v1216_v4  ;;  %1136 = vmatprep.mubr.bf16.mxu1 %v1217_v5  ;;  %v1215_v9 = vld [vmem:[%s1325_s24] sm:$0xff]   ;;  %v1219_v11 = vld [vmem:[%s1336_s29 + $0x48] sm:$0xff]   ;;  %v1222_v14 = vld [vmem:[%s1336_s29 + $0x18] sm:$0xff]  }
  0x16   : > { %v1223_v15 = vld [vmem:[%s1336_s29 + $0x58] sm:$0xff]   ;;  %v1224_v16 = vld [vmem:[%s1336_s29 + $0x20] sm:$0xff]   ;;  %v1226_v18 = vld [vmem:[%s1336_s29 + $0x28] sm:$0xff]  }
  0x17   : > { %1107 = vmatpush3.bf16.msra.mxu0 %v1209_v1  ;;  %1161 = vmatpush3.bf16.msra.mxu1 %v1209_v1  ;;  %v1225_v17 = vld [vmem:[%s1336_s29 + $0x60] sm:$0xff]   ;;  %v1227_v19 = vld [vmem:[%s1336_s29 + $0x68] sm:$0xff]   ;;  %v1228_v20 = vld [vmem:[%s1336_s29 + $0x30] sm:$0xff]  }
  0x18   : > { %1108 = vmatprep.subr.bf16.mxu0 %v1210_v2  ;;  %1154 = vmatprep.subr.bf16.mxu1 %v1210_v2  ;;  %v1229_v21 = vld [vmem:[%s1336_s29 + $0x70] sm:$0xff]   ;;  %v1230_v22 = vld [vmem:[%s1336_s29 + $0x38] sm:$0xff]  }
  0x19   : > { %v1231_v23 = vld [vmem:[%s1336_s29 + $0x78] sm:$0xff]  }
  0x1b   : > { %1109 = vmatpush3.bf16.msra.mxu0 %v1210_v2  ;;  %1162 = vmatpush3.bf16.msra.mxu1 %v1210_v2 }
  0x1c   : > { %1110 = vmatprep.subr.bf16.mxu0 %v1211_v3  ;;  %1155 = vmatprep.subr.bf16.mxu1 %v1211_v3 }
  0x1f   : > { %1111 = vmatpush3.bf16.msra.mxu0 %v1211_v3  ;;  %1163 = vmatpush3.bf16.msra.mxu1 %v1211_v3 }
  0x20   : > { %1112 = vmatprep.subr.bf16.mxu0 %v1212_v6  ;;  %1156 = vmatprep.subr.bf16.mxu1 %v1212_v6 }
  0x23   : > { %1113 = vmatpush3.bf16.msra.mxu0 %v1212_v6  ;;  %1164 = vmatpush3.bf16.msra.mxu1 %v1212_v6 }
  0x24   : > { %1114 = vmatprep.subr.bf16.mxu0 %v1213_v7  ;;  %1157 = vmatprep.subr.bf16.mxu1 %v1213_v7 }
  0x27   : > { %1115 = vmatpush3.bf16.msra.mxu0 %v1213_v7  ;;  %1165 = vmatpush3.bf16.msra.mxu1 %v1213_v7 }
  0x28   : > { %1116 = vmatprep.subr.bf16.mxu0 %v1214_v8  ;;  %1158 = vmatprep.subr.bf16.mxu1 %v1214_v8 }
  0x2b   : > { %1117 = vmatpush3.bf16.msra.mxu0 %v1214_v8  ;;  %1166 = vmatpush3.bf16.msra.mxu1 %v1214_v8 }
  0x2c   : > { %1118 = vmatprep.subr.bf16.mxu0 %v1215_v9  ;;  %1159 = vmatprep.subr.bf16.mxu1 %v1215_v9 }
  0x2f   : > { %1119 = vmatpush3.bf16.msra.mxu0 %v1215_v9  ;;  %1167 = vmatpush3.bf16.msra.mxu1 %v1215_v9 }
  0x32   : > { %1121 = vmatmul.mubr.bf16.vlgmr.msra.gmra.mxu0 %v1218_v10  ;;  %1137 = vmatmul.mubr.bf16.vlgmr.msra.gmra.mxu1 %v1219_v11 }
  0x33   : > { %1124 = vmatprep.mubr.bf16.mxu0 %v1220_v12  ;;  %1140 = vmatprep.mubr.bf16.mxu1 %v1221_v13 }
  0x3a   : > { %1125 = vmatmul.mubr.bf16.gmra.mxu0 %v1222_v14  ;;  %1141 = vmatmul.mubr.bf16.gmra.mxu1 %v1223_v15 }
  0x3b   : > { %1128 = vmatprep.mubr.bf16.mxu0 %v1224_v16  ;;  %1144 = vmatprep.mubr.bf16.mxu1 %v1225_v17 }
  0x42   : > { %1129 = vmatmul.mubr.bf16.gmra.mxu0 %v1226_v18  ;;  %1145 = vmatmul.mubr.bf16.gmra.mxu1 %v1227_v19 }
  0x43   : > { %1132 = vmatprep.mubr.bf16.mxu0 %v1228_v20  ;;  %1148 = vmatprep.mubr.bf16.mxu1 %v1229_v21 }
  0x4a   : > { %1133 = vmatmul.mubr.bf16.gmra.mxu0 %v1230_v22  ;;  %1149 = vmatmul.mubr.bf16.gmra.mxu1 %v1231_v23 }
  0xf2   : > { %v1122_v25 = vpop.f32.mrf.mxu0  ;;  %v1138_v26 = vpop.f32.mrf.mxu1 }
  0xf3   : > { %v834_v27 = vadd.f32 %v1122_v25, %v1363_v24  ;;  %v850_v28 = vadd.f32 %v1138_v26, %v1363_v24 }
  0xf4   : > { %v599_v29 = vpop.f32.mrf.mxu0  ;;  %v663_v30 = vpop.f32.mrf.mxu1 }
  0xf5   : > { %866 = vst [vmem:[%s1368_s8 + $0x10] sm:$0xff] %v834_v27  ;;  %882 = vst [vmem:[%s1368_s8 + $0x90] sm:$0xff] %v850_v28  ;;  %v832_v31 = vadd.f32 %v1363_v24, %v599_v29  ;;  %v848_v32 = vadd.f32 %v1363_v24, %v663_v30 }
  0xf6   : > { %v1123_v33 = vpop.f32.mrf.mxu0  ;;  %v1139_v34 = vpop.f32.mrf.mxu1 }
  0xf7   : > { %864 = vst [vmem:[%s1368_s8] sm:$0xff] %v832_v31  ;;  %880 = vst [vmem:[%s1368_s8 + $0x80] sm:$0xff] %v848_v32  ;;  %v835_v35 = vadd.f32 %v1123_v33, %v1363_v24  ;;  %v851_v36 = vadd.f32 %v1139_v34, %v1363_v24 }
  0xf8   : > { %v602_v37 = vpop.f32.mrf.mxu0  ;;  %v666_v38 = vpop.f32.mrf.mxu1 }
  0xf9   : > { %867 = vst [vmem:[%s1368_s8 + $0x18] sm:$0xff] %v835_v35  ;;  %883 = vst [vmem:[%s1368_s8 + $0x98] sm:$0xff] %v851_v36  ;;  %v833_v39 = vadd.f32 %v1363_v24, %v602_v37  ;;  %v849_v40 = vadd.f32 %v1363_v24, %v666_v38 }
  0xfa   : > { %v1126_v41 = vpop.f32.mrf.mxu0  ;;  %v1142_v42 = vpop.f32.mrf.mxu1 }
  0xfb   : > { %865 = vst [vmem:[%s1368_s8 + $0x8] sm:$0xff] %v833_v39  ;;  %881 = vst [vmem:[%s1368_s8 + $0x88] sm:$0xff] %v849_v40  ;;  %v838_v43 = vadd.f32 %v1126_v41, %v1363_v24  ;;  %v854_v44 = vadd.f32 %v1142_v42, %v1363_v24 }
  0xfc   : > { %v615_v45 = vpop.f32.mrf.mxu0  ;;  %v679_v46 = vpop.f32.mrf.mxu1 }
  0xfd   : > { %870 = vst [vmem:[%s1368_s8 + $0x30] sm:$0xff] %v838_v43  ;;  %886 = vst [vmem:[%s1368_s8 + $0xb0] sm:$0xff] %v854_v44  ;;  %v836_v47 = vadd.f32 %v1363_v24, %v615_v45  ;;  %v852_v48 = vadd.f32 %v1363_v24, %v679_v46 }
  0xfe   : > { %v1127_v49 = vpop.f32.mrf.mxu0  ;;  %v1143_v50 = vpop.f32.mrf.mxu1 }
  0xff   : > { %868 = vst [vmem:[%s1368_s8 + $0x20] sm:$0xff] %v836_v47  ;;  %884 = vst [vmem:[%s1368_s8 + $0xa0] sm:$0xff] %v852_v48  ;;  %v839_v51 = vadd.f32 %v1127_v49, %v1363_v24  ;;  %v855_v52 = vadd.f32 %v1143_v50, %v1363_v24 }
 0x100   : > { %v618_v53 = vpop.f32.mrf.mxu0  ;;  %v682_v54 = vpop.f32.mrf.mxu1 }
 0x101   : > { %871 = vst [vmem:[%s1368_s8 + $0x38] sm:$0xff] %v839_v51  ;;  %887 = vst [vmem:[%s1368_s8 + $0xb8] sm:$0xff] %v855_v52  ;;  %v837_v55 = vadd.f32 %v1363_v24, %v618_v53  ;;  %v853_v56 = vadd.f32 %v1363_v24, %v682_v54 }
 0x102   : > { %v1130_v57 = vpop.f32.mrf.mxu0  ;;  %v1146_v58 = vpop.f32.mrf.mxu1 }
 0x103   : > { %869 = vst [vmem:[%s1368_s8 + $0x28] sm:$0xff] %v837_v55  ;;  %885 = vst [vmem:[%s1368_s8 + $0xa8] sm:$0xff] %v853_v56  ;;  %v842_v59 = vadd.f32 %v1130_v57, %v1363_v24  ;;  %v858_v60 = vadd.f32 %v1146_v58, %v1363_v24 }
 0x104   : > { %v631_v61 = vpop.f32.mrf.mxu0  ;;  %v695_v62 = vpop.f32.mrf.mxu1 }
 0x105   : > { %874 = vst [vmem:[%s1368_s8 + $0x50] sm:$0xff] %v842_v59  ;;  %890 = vst [vmem:[%s1368_s8 + $0xd0] sm:$0xff] %v858_v60  ;;  %v840_v63 = vadd.f32 %v1363_v24, %v631_v61  ;;  %v856_v0 = vadd.f32 %v1363_v24, %v695_v62 }
 0x106   : > { %v1131_v1 = vpop.f32.mrf.mxu0  ;;  %v1147_v2 = vpop.f32.mrf.mxu1 }
 0x107   : > { %872 = vst [vmem:[%s1368_s8 + $0x40] sm:$0xff] %v840_v63  ;;  %888 = vst [vmem:[%s1368_s8 + $0xc0] sm:$0xff] %v856_v0  ;;  %v843_v3 = vadd.f32 %v1131_v1, %v1363_v24  ;;  %v859_v4 = vadd.f32 %v1147_v2, %v1363_v24 }
 0x108   : > { %v634_v5 = vpop.f32.mrf.mxu0  ;;  %v698_v6 = vpop.f32.mrf.mxu1 }
 0x109   : > { %875 = vst [vmem:[%s1368_s8 + $0x58] sm:$0xff] %v843_v3  ;;  %891 = vst [vmem:[%s1368_s8 + $0xd8] sm:$0xff] %v859_v4  ;;  %v841_v7 = vadd.f32 %v1363_v24, %v634_v5  ;;  %v857_v8 = vadd.f32 %v1363_v24, %v698_v6 }
 0x10a   : > { %v1134_v9 = vpop.f32.mrf.mxu0  ;;  %v1150_v10 = vpop.f32.mrf.mxu1 }
 0x10b   : > { %873 = vst [vmem:[%s1368_s8 + $0x48] sm:$0xff] %v841_v7  ;;  %889 = vst [vmem:[%s1368_s8 + $0xc8] sm:$0xff] %v857_v8  ;;  %v846_v11 = vadd.f32 %v1134_v9, %v1363_v24  ;;  %v862_v12 = vadd.f32 %v1150_v10, %v1363_v24 }
 0x10c   : > { %v647_v13 = vpop.f32.mrf.mxu0  ;;  %v711_v14 = vpop.f32.mrf.mxu1 }
 0x10d   : > { %878 = vst [vmem:[%s1368_s8 + $0x70] sm:$0xff] %v846_v11  ;;  %894 = vst [vmem:[%s1368_s8 + $0xf0] sm:$0xff] %v862_v12  ;;  %v844_v15 = vadd.f32 %v1363_v24, %v647_v13  ;;  %v860_v16 = vadd.f32 %v1363_v24, %v711_v14 }
 0x10e   : > { %v1135_v17 = vpop.f32.mrf.mxu0  ;;  %v1151_v18 = vpop.f32.mrf.mxu1 }
 0x10f   : > { %876 = vst [vmem:[%s1368_s8 + $0x60] sm:$0xff] %v844_v15  ;;  %892 = vst [vmem:[%s1368_s8 + $0xe0] sm:$0xff] %v860_v16  ;;  %v847_v19 = vadd.f32 %v1135_v17, %v1363_v24  ;;  %v863_v20 = vadd.f32 %v1151_v18, %v1363_v24 }
 0x110   : > { %v650_v21 = vpop.f32.mrf.mxu0  ;;  %v714_v22 = vpop.f32.mrf.mxu1 }
 0x111   : > { %879 = vst [vmem:[%s1368_s8 + $0x78] sm:$0xff] %v847_v19  ;;  %895 = vst [vmem:[%s1368_s8 + $0xf8] sm:$0xff] %v863_v20  ;;  %v845_v23 = vadd.f32 %v1363_v24, %v650_v21  ;;  %v861_v25 = vadd.f32 %v1363_v24, %v714_v22 }
 0x113   : > { %877 = vst [vmem:[%s1368_s8 + $0x68] sm:$0xff] %v845_v23  ;;  %893 = vst [vmem:[%s1368_s8 + $0xe8] sm:$0xff] %v861_v25 }
 0x114 PF: > { %s13_s16 = sadd.s32 1, %s1270_s16   ;;  %s1453_s12 = smov %s1262_s14 }
 0x115   : > { %p10_p7 = scmp.ge.s32.totalorder %s13_s16, 34   ;;  %s1454_s13 = smov %s1266_s15 }
 0x116   : > { %s1455_s14 = smov %s1458_s17  ;;  %s1456_s15 = smov %s1462_s18 }
 0x117   :  { %12 = sbr.rel (!%p10_p7) target bundleno = 3 (0x3), region = 76 }

// kernel: unet_innermost_forward.6
= control target key start
LH: loop header
LB: loop body
LE: loop exit
PB: predicated region body
PF: predicated region fallthrough
CT: control target
= control target key end

     0   :  { %s358_s9 = smov 0   ;;  %s429_s0 = inlined_call_operand.vmem [shape: f32[8192,128], index: 0, kind: input, shape index: {}]   ;;  %s430_s1 = inlined_call_operand.vmem [shape: f32[1,128], index: 1, kind: output, shape index: {0}]   ;;  %s431_s2 = inlined_call_operand.vmem [shape: f32[1,128], index: 2, kind: output, shape index: {1}]  }
   0x1 LB: > { %s364_s10 = sadd.s32 4294967295, %s341_s9   ;;  %p320_p0 = scmp.ge.s32.totalorder %s341_s9, 1  ;;  %s341_s9 = sphi %s358_s9, %s13_s9  }
   0x2   : > { %p106_p1 = scmp.lt.s32.totalorder %s341_s9, 33 }
   0x4   : > { %p107_p2 = pnand %p320_p0, %p106_p1 }
   0x5   : > { %s321_s11 = sshll.u32 (!%p107_p2), %s364_s10, 5  ;;  %p323_p4 = scmp.ne.s32.totalorder (!%p107_p2), %s364_s10, 0 }
   0x6   : > { %110 = sbr.rel (%p107_p2) target bundleno = 104 (0x68), region = 24  ;;  %p124_p3 = scmp.lt.s32.totalorder (!%p107_p2), %s321_s11, 1023 }
   0xb   : > { %s433_s11 = smov (!%p124_p3, %s321_s11), 1023 }
   0xc   : > { %s322_s12 = sshll.u32 %s433_s11, 3 }
   0xd   : > { %s372_s15 = scalar_lea.vmem %s429_s0, %s322_s12 }
   0xe   : > { %v129_v0 = vld [vmem:[%s372_s15] sm:$0xff]  ;;  %v130_v1 = vld [vmem:[%s372_s15 + $0x8] sm:$0xff]  ;;  %v131_v2 = vld [vmem:[%s372_s15 + $0x10] sm:$0xff] }
   0xf   : > { %v132_v3 = vld [vmem:[%s372_s15 + $0x18] sm:$0xff]  ;;  %v161_v4 = vadd.f32 %v130_v1, %v129_v0  ;;  %v198_v5 = vmul.f32 %v129_v0, %v129_v0  ;;  %v199_v6 = vmul.f32 %v130_v1, %v130_v1  ;;  %v200_v7 = vmul.f32 %v131_v2, %v131_v2  ;;  %v133_v8 = vld [vmem:[%s372_s15 + $0x20] sm:$0xff]  ;;  %v134_v12 = vld [vmem:[%s372_s15 + $0x28] sm:$0xff] }
  0x10   : > { %v201_v10 = vmul.f32 %v132_v3, %v132_v3  ;;  %v202_v14 = vmul.f32 %v133_v8, %v133_v8  ;;  %v135_v16 = vld [vmem:[%s372_s15 + $0x30] sm:$0xff]  ;;  %v203_v18 = vmul.f32 %v134_v12, %v134_v12  ;;  %v136_v20 = vld [vmem:[%s372_s15 + $0x38] sm:$0xff]  ;;  %v137_v24 = vld [vmem:[%s372_s15 + $0x40] sm:$0xff] }
  0x11   : > { %v162_v9 = vadd.f32 %v161_v4, %v131_v2  ;;  %v230_v11 = vadd.f32 %v199_v6, %v198_v5  ;;  %v204_v22 = vmul.f32 %v135_v16, %v135_v16  ;;  %v205_v26 = vmul.f32 %v136_v20, %v136_v20  ;;  %v138_v28 = vld [vmem:[%s372_s15 + $0x48] sm:$0xff]  ;;  %v139_v32 = vld [vmem:[%s372_s15 + $0x50] sm:$0xff]  ;;  %v140_v36 = vld [vmem:[%s372_s15 + $0x58] sm:$0xff] }
  0x12   : > { %v206_v30 = vmul.f32 %v137_v24, %v137_v24  ;;  %v207_v34 = vmul.f32 %v138_v28, %v138_v28  ;;  %v208_v38 = vmul.f32 %v139_v32, %v139_v32  ;;  %v141_v40 = vld [vmem:[%s372_s15 + $0x60] sm:$0xff]  ;;  %v209_v42 = vmul.f32 %v140_v36, %v140_v36  ;;  %v142_v44 = vld [vmem:[%s372_s15 + $0x68] sm:$0xff]  ;;  %v143_v48 = vld [vmem:[%s372_s15 + $0x70] sm:$0xff] }
  0x13   : > { %v163_v13 = vadd.f32 %v162_v9, %v132_v3  ;;  %v231_v15 = vadd.f32 %v230_v11, %v200_v7  ;;  %v210_v46 = vmul.f32 %v141_v40, %v141_v40  ;;  %v211_v50 = vmul.f32 %v142_v44, %v142_v44  ;;  %v144_v52 = vld [vmem:[%s372_s15 + $0x78] sm:$0xff]  ;;  %v145_v56 = vld [vmem:[%s372_s15 + $0x80] sm:$0xff]  ;;  %v146_v60 = vld [vmem:[%s372_s15 + $0x88] sm:$0xff] }
  0x14   : > { %v212_v54 = vmul.f32 %v143_v48, %v143_v48  ;;  %v213_v58 = vmul.f32 %v144_v52, %v144_v52  ;;  %v214_v62 = vmul.f32 %v145_v56, %v145_v56  ;;  %v147_v0 = vld [vmem:[%s372_s15 + $0x90] sm:$0xff]  ;;  %v215_v2 = vmul.f32 %v146_v60, %v146_v60  ;;  %v148_v4 = vld [vmem:[%s372_s15 + $0x98] sm:$0xff] }
  0x15   : > { %v164_v17 = vadd.f32 %v163_v13, %v133_v8  ;;  %v232_v19 = vadd.f32 %v231_v15, %v201_v10  ;;  %v216_v6 = vmul.f32 %v147_v0, %v147_v0  ;;  %v149_v8 = vld [vmem:[%s372_s15 + $0xa0] sm:$0xff]  ;;  %v217_v10 = vmul.f32 %v148_v4, %v148_v4 }
  0x17   : > { %v165_v21 = vadd.f32 %v164_v17, %v134_v12  ;;  %v233_v23 = vadd.f32 %v232_v19, %v202_v14  ;;  %v150_v12 = vld [vmem:[%s372_s15 + $0xa8] sm:$0xff]  ;;  %v218_v14 = vmul.f32 %v149_v8, %v149_v8 }
  0x19   : > { %v166_v25 = vadd.f32 %v165_v21, %v135_v16  ;;  %v234_v27 = vadd.f32 %v233_v23, %v203_v18  ;;  %v151_v16 = vld [vmem:[%s372_s15 + $0xb0] sm:$0xff]  ;;  %v219_v18 = vmul.f32 %v150_v12, %v150_v12 }
  0x1b   : > { %v167_v29 = vadd.f32 %v166_v25, %v136_v20  ;;  %v235_v31 = vadd.f32 %v234_v27, %v204_v22  ;;  %v152_v20 = vld [vmem:[%s372_s15 + $0xb8] sm:$0xff]  ;;  %v220_v22 = vmul.f32 %v151_v16, %v151_v16 }
  0x1d   : > { %v168_v33 = vadd.f32 %v167_v29, %v137_v24  ;;  %v236_v35 = vadd.f32 %v235_v31, %v205_v26  ;;  %v153_v24 = vld [vmem:[%s372_s15 + $0xc0] sm:$0xff]  ;;  %v221_v26 = vmul.f32 %v152_v20, %v152_v20 }
  0x1f   : > { %v169_v37 = vadd.f32 %v168_v33, %v138_v28  ;;  %v237_v39 = vadd.f32 %v236_v35, %v206_v30  ;;  %v154_v28 = vld [vmem:[%s372_s15 + $0xc8] sm:$0xff]  ;;  %v222_v30 = vmul.f32 %v153_v24, %v153_v24 }
  0x21   : > { %v170_v41 = vadd.f32 %v169_v37, %v139_v32  ;;  %v238_v43 = vadd.f32 %v237_v39, %v207_v34  ;;  %v155_v32 = vld [vmem:[%s372_s15 + $0xd0] sm:$0xff]  ;;  %v223_v34 = vmul.f32 %v154_v28, %v154_v28 }
  0x23   : > { %v171_v45 = vadd.f32 %v170_v41, %v140_v36  ;;  %v239_v47 = vadd.f32 %v238_v43, %v208_v38  ;;  %v156_v36 = vld [vmem:[%s372_s15 + $0xd8] sm:$0xff]  ;;  %v224_v38 = vmul.f32 %v155_v32, %v155_v32 }
  0x25   : > { %v172_v49 = vadd.f32 %v171_v45, %v141_v40  ;;  %v240_v51 = vadd.f32 %v239_v47, %v209_v42  ;;  %v157_v40 = vld [vmem:[%s372_s15 + $0xe0] sm:$0xff]  ;;  %v225_v42 = vmul.f32 %v156_v36, %v156_v36 }
  0x27   : > { %v173_v53 = vadd.f32 %v172_v49, %v142_v44  ;;  %v241_v55 = vadd.f32 %v240_v51, %v210_v46  ;;  %v158_v44 = vld [vmem:[%s372_s15 + $0xe8] sm:$0xff]  ;;  %v226_v46 = vmul.f32 %v157_v40, %v157_v40 }
  0x29   : > { %v174_v57 = vadd.f32 %v173_v53, %v143_v48  ;;  %v242_v59 = vadd.f32 %v241_v55, %v211_v50  ;;  %v159_v48 = vld [vmem:[%s372_s15 + $0xf0] sm:$0xff]  ;;  %v227_v50 = vmul.f32 %v158_v44, %v158_v44 }
  0x2b   : > { %v175_v61 = vadd.f32 %v174_v57, %v144_v52  ;;  %v243_v63 = vadd.f32 %v242_v59, %v212_v54  ;;  %v160_v52 = vld [vmem:[%s372_s15 + $0xf8] sm:$0xff]  ;;  %v228_v54 = vmul.f32 %v159_v48, %v159_v48 }
  0x2c   : > { %v229_v57 = vmul.f32 %v160_v52, %v160_v52 }
  0x2d   : > { %v176_v1 = vadd.f32 %v175_v61, %v145_v56  ;;  %v244_v3 = vadd.f32 %v243_v63, %v213_v58 }
  0x2f   : > { %v177_v5 = vadd.f32 %v176_v1, %v146_v60  ;;  %v245_v7 = vadd.f32 %v244_v3, %v214_v62 }
  0x31   : > { %v178_v9 = vadd.f32 %v177_v5, %v147_v0  ;;  %v246_v11 = vadd.f32 %v245_v7, %v215_v2 }
  0x33   : > { %v179_v13 = vadd.f32 %v178_v9, %v148_v4  ;;  %v247_v15 = vadd.f32 %v246_v11, %v216_v6 }
  0x35   : > { %v180_v17 = vadd.f32 %v179_v13, %v149_v8  ;;  %v248_v19 = vadd.f32 %v247_v15, %v217_v10 }
  0x37   : > { %v181_v21 = vadd.f32 %v180_v17, %v150_v12  ;;  %v249_v23 = vadd.f32 %v248_v19, %v218_v14 }
  0x39   : > { %v182_v25 = vadd.f32 %v181_v21, %v151_v16  ;;  %v250_v27 = vadd.f32 %v249_v23, %v219_v18 }
  0x3b   : > { %v183_v29 = vadd.f32 %v182_v25, %v152_v20  ;;  %v251_v31 = vadd.f32 %v250_v27, %v220_v22 }
  0x3d   : > { %v184_v33 = vadd.f32 %v183_v29, %v153_v24  ;;  %v252_v35 = vadd.f32 %v251_v31, %v221_v26 }
  0x3f   : > { %v185_v37 = vadd.f32 %v184_v33, %v154_v28  ;;  %v253_v39 = vadd.f32 %v252_v35, %v222_v30 }
  0x41   : > { %v186_v41 = vadd.f32 %v185_v37, %v155_v32  ;;  %v254_v43 = vadd.f32 %v253_v39, %v223_v34 }
  0x43   : > { %v187_v45 = vadd.f32 %v186_v41, %v156_v36  ;;  %v255_v47 = vadd.f32 %v254_v43, %v224_v38 }
  0x45   : > { %v188_v49 = vadd.f32 %v187_v45, %v157_v40  ;;  %v256_v51 = vadd.f32 %v255_v47, %v225_v42 }
  0x47   : > { %v189_v53 = vadd.f32 %v188_v49, %v158_v44  ;;  %v257_v55 = vadd.f32 %v256_v51, %v226_v46 }
  0x49   : > { %v190_v56 = vadd.f32 %v189_v53, %v159_v48  ;;  %v258_v58 = vadd.f32 %v257_v55, %v227_v50 }
  0x4b   : > { %v191_v59 = vadd.f32 %v190_v56, %v160_v52  ;;  %v259_v60 = vadd.f32 %v258_v58, %v228_v54 }
  0x4d   : > { %v192_v61 = vrot.slane %v191_v59, 4  ;;  %v260_v62 = vadd.f32 %v259_v60, %v229_v57 }
  0x4f   : > { %v193_v63 = vadd.f32 %v192_v61, %v191_v59  ;;  %v261_v0 = vrot.slane %v260_v62, 4 }
  0x51   : > { %v194_v1 = vrot.slane %v193_v63, 2  ;;  %v262_v2 = vadd.f32 %v261_v0, %v260_v62 }
  0x53   : > { %v195_v3 = vadd.f32 %v194_v1, %v193_v63  ;;  %v263_v4 = vrot.slane %v262_v2, 2 }
  0x55   : > { %v196_v5 = vrot.slane %v195_v3, 1  ;;  %v264_v6 = vadd.f32 %v263_v4, %v262_v2  ;;  %270 = sbr.rel (%p323_p4) target bundleno = 92 (0x5c), region = 28 }
  0x57   : > { %v197_v7 = vadd.f32 %v196_v5, %v195_v3  ;;  %v265_v8 = vrot.slane %v264_v6, 1 }
  0x59   : > { %v266_v9 = vadd.f32 %v265_v8, %v264_v6 }
  0x5a   : > { %271 = vst [vmem:[%s430_s1] sm:$0x1] %v197_v7 }
  0x5b   : > { %272 = vst [vmem:[%s431_s2] sm:$0x1] %v266_v9 }
  0x5c PF: > { %p324_p5 = scmp.eq.s32.totalorder %s364_s10, 0 }
  0x5e   : > { %276 = sbr.rel (%p324_p5) target bundleno = 104 (0x68), region = 32 }
  0x63   : > { %v277_v10 = vld [vmem:[%s430_s1] sm:$0x1] }
  0x64   : > { %v280_v11 = vld [vmem:[%s431_s2] sm:$0x1]  ;;  %v278_v12 = vadd.f32 %v277_v10, %v197_v7 }
  0x65   : > { %v281_v13 = vadd.f32 %v280_v11, %v266_v9 }
  0x66   : > { %279 = vst [vmem:[%s430_s1] sm:$0x1] %v278_v12 }
  0x67   : > { %282 = vst [vmem:[%s431_s2] sm:$0x1] %v281_v13 }
  0x68 PF: > { %s13_s9 = sadd.s32 1, %s341_s9  }
  0x69   : > { %p10_p6 = scmp.ge.s32.totalorder %s13_s9, 34  }
  0x6b   :  { %12 = sbr.rel (!%p10_p6) target bundleno = 1 (0x1), region = 66 }

// kernel: unet_innermost_forward.7
= control target key start
LH: loop header
LB: loop body
LE: loop exit
PB: predicated region body
PF: predicated region fallthrough
CT: control target
= control target key end

     0   :  { %s421_s12 = smov 0   ;;  %s580_s0 = inlined_call_operand.vmem [shape: f32[8192,128], index: 0, kind: input, shape index: {}]   ;;  %s581_s1 = inlined_call_operand.vmem [shape: f32[1,128], index: 1, kind: input, shape index: {}]   ;;  %s582_s2 = inlined_call_operand.vmem [shape: f32[1,128], index: 2, kind: input, shape index: {}]   ;;  %s583_s3 = inlined_call_operand.vmem [shape: f32[8192,128], index: 3, kind: output, shape index: {}]  }
   0x1 LB: > { %s372_s13 = sadd.s32 4294967295, %s399_s12   ;;  %p376_p0 = scmp.ge.s32.totalorder %s399_s12, 1  ;;  %s399_s12 = sphi %s421_s12, %s13_s12  }
   0x2   : > { %p138_p1 = scmp.lt.s32.totalorder %s399_s12, 33 }
   0x4   : > { %p139_p2 = pnand %p376_p0, %p138_p1 }
   0x5   : > { %s377_s14 = sshll.u32 (!%p139_p2), %s372_s13, 5 }
   0x6   : > { %142 = sbr.rel (%p139_p2) target bundleno = 38 (0x26), region = 32  ;;  %p163_p3 = scmp.lt.s32.totalorder (!%p139_p2), %s377_s14, 1023 }
   0xb   : > { %s585_s14 = smov (!%p163_p3, %s377_s14), 1023  ;;  %v432_v0 = vld [vmem:[%s581_s1] ss:$0 sm:$0xff] }
   0xc   : > { %s378_s15 = sshll.u32 %s585_s14, 3  ;;  %v442_v1 = vld [vmem:[%s582_s2] ss:$0 sm:$0xff] }
   0xd   : > { %s437_s20 = scalar_lea.vmem %s580_s0, %s378_s15  ;;  %s456_s25 = scalar_lea.vmem %s583_s3, %s378_s15 }
   0xe   : > { %v174_v2 = vld [vmem:[%s437_s20] sm:$0xff]  ;;  %v175_v3 = vld [vmem:[%s437_s20 + $0x8] sm:$0xff]  ;;  %v176_v4 = vld [vmem:[%s437_s20 + $0x10] sm:$0xff] }
   0xf   : > { %v213_v5 = vmul.f32 %v432_v0, %v174_v2  ;;  %v214_v6 = vmul.f32 %v432_v0, %v175_v3  ;;  %v215_v7 = vmul.f32 %v432_v0, %v176_v4  ;;  %v177_v8 = vld [vmem:[%s437_s20 + $0x18] sm:$0xff]  ;;  %v178_v9 = vld [vmem:[%s437_s20 + $0x20] sm:$0xff]  ;;  %v179_v10 = vld [vmem:[%s437_s20 + $0x28] sm:$0xff] }
  0x10   : > { %v216_v11 = vmul.f32 %v432_v0, %v177_v8  ;;  %v217_v12 = vmul.f32 %v432_v0, %v178_v9  ;;  %v218_v13 = vmul.f32 %v432_v0, %v179_v10  ;;  %v180_v14 = vld [vmem:[%s437_s20 + $0x30] sm:$0xff]  ;;  %v181_v15 = vld [vmem:[%s437_s20 + $0x38] sm:$0xff]  ;;  %v182_v16 = vld [vmem:[%s437_s20 + $0x40] sm:$0xff] }
  0x11   : > { %v252_v17 = vadd.f32 %v442_v1, %v213_v5  ;;  %v253_v18 = vadd.f32 %v442_v1, %v214_v6  ;;  %v254_v19 = vadd.f32 %v442_v1, %v215_v7  ;;  %v219_v20 = vmul.f32 %v432_v0, %v180_v14  ;;  %v183_v21 = vld [vmem:[%s437_s20 + $0x48] sm:$0xff]  ;;  %v184_v22 = vld [vmem:[%s437_s20 + $0x50] sm:$0xff]  ;;  %v185_v23 = vld [vmem:[%s437_s20 + $0x58] sm:$0xff] }
  0x12   : > { %v255_v24 = vadd.f32 %v442_v1, %v216_v11  ;;  %v256_v25 = vadd.f32 %v442_v1, %v217_v12  ;;  %v257_v26 = vadd.f32 %v442_v1, %v218_v13  ;;  %v220_v27 = vmul.f32 %v432_v0, %v181_v15  ;;  %v186_v28 = vld [vmem:[%s437_s20 + $0x60] sm:$0xff]  ;;  %v187_v29 = vld [vmem:[%s437_s20 + $0x68] sm:$0xff]  ;;  %v188_v30 = vld [vmem:[%s437_s20 + $0x70] sm:$0xff] }
  0x13   : > { %284 = vst [vmem:[%s456_s25] sm:$0xff] %v252_v17  ;;  %285 = vst [vmem:[%s456_s25 + $0x8] sm:$0xff] %v253_v18  ;;  %v258_v31 = vadd.f32 %v442_v1, %v219_v20  ;;  %v221_v32 = vmul.f32 %v432_v0, %v182_v16  ;;  %v222_v33 = vmul.f32 %v432_v0, %v183_v21  ;;  %v189_v35 = vld [vmem:[%s437_s20 + $0x78] sm:$0xff]  ;;  %v190_v40 = vld [vmem:[%s437_s20 + $0x80] sm:$0xff] }
  0x14   : > { %286 = vst [vmem:[%s456_s25 + $0x10] sm:$0xff] %v254_v19  ;;  %v223_v34 = vmul.f32 %v432_v0, %v184_v22  ;;  %287 = vst [vmem:[%s456_s25 + $0x18] sm:$0xff] %v255_v24  ;;  %v259_v36 = vadd.f32 %v442_v1, %v220_v27  ;;  %v224_v37 = vmul.f32 %v432_v0, %v185_v23  ;;  %v191_v41 = vld [vmem:[%s437_s20 + $0x88] sm:$0xff]  ;;  %v192_v42 = vld [vmem:[%s437_s20 + $0x90] sm:$0xff] }
  0x15   : > { %288 = vst [vmem:[%s456_s25 + $0x20] sm:$0xff] %v256_v25  ;;  %289 = vst [vmem:[%s456_s25 + $0x28] sm:$0xff] %v257_v26  ;;  %v225_v38 = vmul.f32 %v432_v0, %v186_v28  ;;  %v226_v39 = vmul.f32 %v432_v0, %v187_v29  ;;  %v260_v43 = vadd.f32 %v442_v1, %v221_v32  ;;  %v193_v47 = vld [vmem:[%s437_s20 + $0x98] sm:$0xff]  ;;  %v194_v48 = vld [vmem:[%s437_s20 + $0xa0] sm:$0xff] }
  0x16   : > { %290 = vst [vmem:[%s456_s25 + $0x30] sm:$0xff] %v258_v31  ;;  %v261_v44 = vadd.f32 %v442_v1, %v222_v33  ;;  %v262_v45 = vadd.f32 %v442_v1, %v223_v34  ;;  %v227_v46 = vmul.f32 %v432_v0, %v188_v30  ;;  %v195_v49 = vld [vmem:[%s437_s20 + $0xa8] sm:$0xff]  ;;  %291 = vst [vmem:[%s456_s25 + $0x38] sm:$0xff] %v259_v36  ;;  %v196_v54 = vld [vmem:[%s437_s20 + $0xb0] sm:$0xff] }
  0x17   : > { %v263_v50 = vadd.f32 %v442_v1, %v224_v37  ;;  %v264_v51 = vadd.f32 %v442_v1, %v225_v38  ;;  %v265_v52 = vadd.f32 %v442_v1, %v226_v39  ;;  %v228_v53 = vmul.f32 %v432_v0, %v189_v35  ;;  %292 = vst [vmem:[%s456_s25 + $0x40] sm:$0xff] %v260_v43  ;;  %v197_v59 = vld [vmem:[%s437_s20 + $0xb8] sm:$0xff]  ;;  %v198_v2 = vld [vmem:[%s437_s20 + $0xc0] sm:$0xff]  ;;  %v199_v3 = vld [vmem:[%s437_s20 + $0xc8] sm:$0xff] }
  0x18   : > { %293 = vst [vmem:[%s456_s25 + $0x48] sm:$0xff] %v261_v44  ;;  %294 = vst [vmem:[%s456_s25 + $0x50] sm:$0xff] %v262_v45  ;;  %v266_v55 = vadd.f32 %v442_v1, %v227_v46  ;;  %v229_v56 = vmul.f32 %v432_v0, %v190_v40  ;;  %v230_v57 = vmul.f32 %v432_v0, %v191_v41  ;;  %v200_v4 = vld [vmem:[%s437_s20 + $0xd0] sm:$0xff]  ;;  %v201_v9 = vld [vmem:[%s437_s20 + $0xd8] sm:$0xff] }
  0x19   : > { %v231_v58 = vmul.f32 %v432_v0, %v192_v42  ;;  %295 = vst [vmem:[%s456_s25 + $0x58] sm:$0xff] %v263_v50  ;;  %296 = vst [vmem:[%s456_s25 + $0x60] sm:$0xff] %v264_v51  ;;  %v267_v60 = vadd.f32 %v442_v1, %v228_v53  ;;  %v232_v61 = vmul.f32 %v432_v0, %v193_v47  ;;  %v202_v10 = vld [vmem:[%s437_s20 + $0xe0] sm:$0xff]  ;;  %v203_v11 = vld [vmem:[%s437_s20 + $0xe8] sm:$0xff] }
  0x1a   : > { %297 = vst [vmem:[%s456_s25 + $0x68] sm:$0xff] %v265_v52  ;;  %v233_v62 = vmul.f32 %v432_v0, %v194_v48  ;;  %v234_v63 = vmul.f32 %v432_v0, %v195_v49  ;;  %298 = vst [vmem:[%s456_s25 + $0x70] sm:$0xff] %v266_v55  ;;  %v268_v5 = vadd.f32 %v442_v1, %v229_v56  ;;  %v204_v16 = vld [vmem:[%s437_s20 + $0xf0] sm:$0xff]  ;;  %v205_v21 = vld [vmem:[%s437_s20 + $0xf8] sm:$0xff] }
  0x1b   : > { %v269_v6 = vadd.f32 %v442_v1, %v230_v57  ;;  %v270_v7 = vadd.f32 %v442_v1, %v231_v58  ;;  %v235_v8 = vmul.f32 %v432_v0, %v196_v54  ;;  %299 = vst [vmem:[%s456_s25 + $0x78] sm:$0xff] %v267_v60  ;;  %v271_v12 = vadd.f32 %v442_v1, %v232_v61 }
  0x1c   : > { %v272_v13 = vadd.f32 %v442_v1, %v233_v62  ;;  %v273_v14 = vadd.f32 %v442_v1, %v234_v63  ;;  %v236_v15 = vmul.f32 %v432_v0, %v197_v59  ;;  %300 = vst [vmem:[%s456_s25 + $0x80] sm:$0xff] %v268_v5  ;;  %v237_v18 = vmul.f32 %v432_v0, %v198_v2 }
  0x1d   : > { %301 = vst [vmem:[%s456_s25 + $0x88] sm:$0xff] %v269_v6  ;;  %302 = vst [vmem:[%s456_s25 + $0x90] sm:$0xff] %v270_v7  ;;  %v274_v17 = vadd.f32 %v442_v1, %v235_v8  ;;  %v238_v19 = vmul.f32 %v432_v0, %v199_v3  ;;  %v239_v20 = vmul.f32 %v432_v0, %v200_v4 }
  0x1e   : > { %303 = vst [vmem:[%s456_s25 + $0x98] sm:$0xff] %v271_v12  ;;  %304 = vst [vmem:[%s456_s25 + $0xa0] sm:$0xff] %v272_v13  ;;  %v275_v22 = vadd.f32 %v442_v1, %v236_v15  ;;  %v240_v23 = vmul.f32 %v432_v0, %v201_v9  ;;  %v241_v24 = vmul.f32 %v432_v0, %v202_v10 }
  0x1f   : > { %305 = vst [vmem:[%s456_s25 + $0xa8] sm:$0xff] %v273_v14  ;;  %v242_v25 = vmul.f32 %v432_v0, %v203_v11  ;;  %306 = vst [vmem:[%s456_s25 + $0xb0] sm:$0xff] %v274_v17  ;;  %v276_v26 = vadd.f32 %v442_v1, %v237_v18  ;;  %v277_v27 = vadd.f32 %v442_v1, %v238_v19 }
  0x20   : > { %v278_v28 = vadd.f32 %v442_v1, %v239_v20  ;;  %v243_v29 = vmul.f32 %v432_v0, %v204_v16  ;;  %307 = vst [vmem:[%s456_s25 + $0xb8] sm:$0xff] %v275_v22  ;;  %v279_v30 = vadd.f32 %v442_v1, %v240_v23  ;;  %v280_v31 = vadd.f32 %v442_v1, %v241_v24 }
  0x21   : > { %v281_v32 = vadd.f32 %v442_v1, %v242_v25  ;;  %v244_v33 = vmul.f32 %v432_v0, %v205_v21  ;;  %308 = vst [vmem:[%s456_s25 + $0xc0] sm:$0xff] %v276_v26  ;;  %309 = vst [vmem:[%s456_s25 + $0xc8] sm:$0xff] %v277_v27 }
  0x22   : > { %310 = vst [vmem:[%s456_s25 + $0xd0] sm:$0xff] %v278_v28  ;;  %v282_v34 = vadd.f32 %v442_v1, %v243_v29  ;;  %311 = vst [vmem:[%s456_s25 + $0xd8] sm:$0xff] %v279_v30 }
  0x23   : > { %312 = vst [vmem:[%s456_s25 + $0xe0] sm:$0xff] %v280_v31  ;;  %313 = vst [vmem:[%s456_s25 + $0xe8] sm:$0xff] %v281_v32  ;;  %v283_v35 = vadd.f32 %v442_v1, %v244_v33 }
  0x24   : > { %314 = vst [vmem:[%s456_s25 + $0xf0] sm:$0xff] %v282_v34 }
  0x25   : > { %315 = vst [vmem:[%s456_s25 + $0xf8] sm:$0xff] %v283_v35 }
  0x26 PF: > { %s13_s12 = sadd.s32 1, %s399_s12  }
  0x27   : > { %p10_p4 = scmp.ge.s32.totalorder %s13_s12, 34  }
  0x29   :  { %12 = sbr.rel (!%p10_p4) target bundleno = 1 (0x1), region = 62 }

</bundles_post_ra>
